<compile_context>
chip_gen: v6e
topology: v6e:2x2x1
jax: 0.10.0
libtpu: 0.0.40
codegen_flags: <defaults>
</compile_context>

<pallas_src>
import functools

import jax
import jax.numpy as jnp
from jax import lax
from jax.experimental import pallas as pl
from jax.experimental.pallas import tpu as pltpu

LEAKY_SLOPE = 0.01   # torch.nn.LeakyReLU default negative_slope
LN_EPS = 1e-5        # torch.nn.LayerNorm default eps


def _block(h, w_ref, vec_ref):
    """Linear -> LeakyReLU -> LayerNorm (dropout = identity in eval mode)."""
    v = vec_ref[...]                      # (3, fan_out): [bias; gamma; beta]
    z = jnp.dot(h, w_ref[...], preferred_element_type=jnp.float32) + v[0:1, :]
    z = jnp.maximum(z, LEAKY_SLOPE * z)   # LeakyReLU (slope < 1 => max form is exact)
    mean = jnp.mean(z, axis=-1, keepdims=True)
    c = z - mean
    var = jnp.mean(c * c, axis=-1, keepdims=True)
    return c * lax.rsqrt(var + LN_EPS) * v[1:2, :] + v[2:3, :]


def _mlp_kernel(
    x_ref,
    w1_ref, v1_ref,
    w2_ref, v2_ref,
    w3_ref, v3_ref,
    w4_ref, v4_ref,
    wh_ref, bh_ref,
    out_ref,
):
    h = x_ref[...].astype(jnp.float32)

    h = _block(h, w1_ref, v1_ref)   # fc1 -> LeakyReLU -> LN(128) -> dropout(id)
    h = _block(h, w2_ref, v2_ref)   # fc2 -> LeakyReLU -> LN(256)
    h = _block(h, w3_ref, v3_ref)   # fc3 -> LeakyReLU -> LN(256)
    h = _block(h, w4_ref, v4_ref)   # fc4 -> LeakyReLU -> LN(128)

    # Fused mu|logvar head, lane-padded to a dense >=128-lane output tile.
    out = jnp.dot(h, wh_ref[...], preferred_element_type=jnp.float32) + bh_ref[...]
    out_ref[...] = out.astype(out_ref.dtype)


@functools.partial(jax.jit, static_argnames=("block_b",))
def nn_5_2_forward(x, params, *, block_b=512):
    """params: flat tuple (w1,b1,g1,be1, ..., w4,b4,g4,be4, wmu,bmu, wlv,blv).

    Weights are stored as (in, out) so the kernel computes x @ W + b (equivalent
    to PyTorch's x @ W.T + b). Returns (mu, logvar), each (B, Dout) float32.
    """
    (w1, b1, g1, be1,
     w2, b2, g2, be2,
     w3, b3, g3, be3,
     w4, b4, g4, be4,
     wmu, bmu, wlv, blv) = [p.astype(jnp.float32) for p in params]

    B, Din = x.shape
    Dout = wmu.shape[-1]

    # Pack (bias, gamma, beta) per layer into one (3, fan_out) array each.
    v1 = jnp.concatenate([b1, g1, be1], axis=0)
    v2 = jnp.concatenate([b2, g2, be2], axis=0)
    v3 = jnp.concatenate([b3, g3, be3], axis=0)
    v4 = jnp.concatenate([b4, g4, be4], axis=0)

    # Fuse the two heads and zero-pad the output dim to a lane-dense multiple of 128.
    P = max(128, ((2 * Dout + 127) // 128) * 128)
    wh = jnp.concatenate([wmu, wlv], axis=1)                  # (128, 2*Dout)
    wh = jnp.pad(wh, ((0, 0), (0, P - 2 * Dout)))             # (128, P)
    bh = jnp.pad(jnp.concatenate([bmu, blv], axis=1),
                 ((0, 0), (0, P - 2 * Dout)))                 # (1, P)

    # Batch tiling: single grid step whenever B <= block_b (best on single-TC
    # v5e/v6e); larger batches split into "parallel" steps so v7x can use both TCs.
    tb = B if B <= block_b else block_b
    grid = (pl.cdiv(B, tb),)

    x_spec = pl.BlockSpec((tb, Din), lambda i: (i, 0))
    const = lambda i: (0, 0)   # params: same block every step (not re-fetched)
    param_arrays = (w1, v1, w2, v2, w3, v3, w4, v4, wh, bh)
    param_specs = [pl.BlockSpec(p.shape, const) for p in param_arrays]
    out_spec = pl.BlockSpec((tb, P), lambda i: (i, 0))

    out = pl.pallas_call(
        _mlp_kernel,
        out_shape=jax.ShapeDtypeStruct((B, P), jnp.float32),
        grid_spec=pltpu.PrefetchScalarGridSpec(
            num_scalar_prefetch=0,
            grid=grid,
            in_specs=[x_spec] + param_specs,
            out_specs=out_spec,
        ),
        compiler_params=pltpu.CompilerParams(
            dimension_semantics=("parallel",),
        ),
    )(x, *param_arrays)

    mu = out[:, :Dout]
    logvar = out[:, Dout:2 * Dout]
    return mu, logvar


def init_params(key, d_in, d_out):
    """Deterministic init mirroring NN_5_2's parameter shapes (weights as (in, out))."""
    dims = [d_in, 128, 256, 256, 128]
    params = []
    keys = jax.random.split(key, 6)
    for li in range(4):
        fan_in, fan_out = dims[li], dims[li + 1]
        kw, kb = jax.random.split(keys[li])
        bound = 1.0 / jnp.sqrt(fan_in)
        w = jax.random.uniform(kw, (fan_in, fan_out), jnp.float32, -bound, bound)
        b = jax.random.uniform(kb, (1, fan_out), jnp.float32, -bound, bound)
        gamma = jnp.ones((1, fan_out), jnp.float32)
        beta = jnp.zeros((1, fan_out), jnp.float32)
        params += [w, b, gamma, beta]
    bound = 1.0 / jnp.sqrt(128.0)
    for ki in (4, 5):
        kw, kb = jax.random.split(keys[ki])
        w_h = jax.random.uniform(kw, (128, d_out), jnp.float32, -bound, bound)
        b_h = jax.random.uniform(kb, (1, d_out), jnp.float32, -bound, bound)
        params += [w_h, b_h]
    return tuple(params)


def _ref_block(h, w, b, g, be):
    z = jnp.dot(h, w, precision=jax.lax.Precision.HIGHEST) + b
    z = jnp.where(z > 0, z, LEAKY_SLOPE * z)
    mean = jnp.mean(z, axis=-1, keepdims=True)
    c = z - mean
    var = jnp.mean(c * c, axis=-1, keepdims=True)
    return c * lax.rsqrt(var + LN_EPS) * g + be


def reference_forward(x, params):
    """Pure-JAX f32 reference (eval-mode dropout), mirrors the PyTorch module."""
    (w1, b1, g1, be1, w2, b2, g2, be2,
     w3, b3, g3, be3, w4, b4, g4, be4,
     wmu, bmu, wlv, blv) = params
    h = x.astype(jnp.float32)
    h = _ref_block(h, w1, b1, g1, be1)
    h = _ref_block(h, w2, b2, g2, be2)
    h = _ref_block(h, w3, b3, g3, be3)
    h = _ref_block(h, w4, b4, g4, be4)
    mu = jnp.dot(h, wmu, precision=jax.lax.Precision.HIGHEST) + bmu
    lv = jnp.dot(h, wlv, precision=jax.lax.Precision.HIGHEST) + blv
    return mu, lv


if __name__ == "__main__":
    key = jax.random.PRNGKey(0)
    k_x, k_p = jax.random.split(key)

    # Small shapes consistent with the module: train_x.size(-1)=16, train_y.size(-1)=4.
    B, D_IN, D_OUT = 64, 16, 4
    x = jax.random.normal(k_x, (B, D_IN), jnp.float32)
    params = init_params(k_p, D_IN, D_OUT)

    mu, logvar = nn_5_2_forward(x, params)
    mu = jax.block_until_ready(mu)
    logvar = jax.block_until_ready(logvar)

    assert mu.shape == (B, D_OUT), mu.shape
    assert logvar.shape == (B, D_OUT), logvar.shape

    mu_ref, lv_ref = reference_forward(x, params)
    err_mu = float(jnp.max(jnp.abs(mu - mu_ref)))
    err_lv = float(jnp.max(jnp.abs(logvar - lv_ref)))
    # Tolerance covers MXU-vs-XLA f32 matmul precision differences across generations.
    assert jnp.allclose(mu, mu_ref, atol=2e-2, rtol=2e-2), err_mu
    assert jnp.allclose(logvar, lv_ref, atol=2e-2, rtol=2e-2), err_lv

    print("KERNEL_OK")
</pallas_src>

<mosaic_0001>
module attributes {stable_mosaic.version = 11 : i64} {
  func.func @_mlp_kernel(%arg0: i32, %arg1: memref<64x16xf32, #tpu.memory_space<vmem>>, %arg2: memref<16x128xf32, #tpu.memory_space<vmem>>, %arg3: memref<3x128xf32, #tpu.memory_space<vmem>>, %arg4: memref<128x256xf32, #tpu.memory_space<vmem>>, %arg5: memref<3x256xf32, #tpu.memory_space<vmem>>, %arg6: memref<256x256xf32, #tpu.memory_space<vmem>>, %arg7: memref<3x256xf32, #tpu.memory_space<vmem>>, %arg8: memref<256x128xf32, #tpu.memory_space<vmem>>, %arg9: memref<3x128xf32, #tpu.memory_space<vmem>>, %arg10: memref<128x128xf32, #tpu.memory_space<vmem>>, %arg11: memref<1x128xf32, #tpu.memory_space<vmem>>, %arg12: memref<64x128xf32, #tpu.memory_space<vmem>>) attributes {dimension_semantics = [#tpu.dimension_semantics<parallel>], iteration_bounds = array<i64: 1>, scalar_prefetch = 0 : i64, scratch_operands = 0 : i64, tpu.core_type = #tpu.core_type<tc>, window_params = [{transform_indices = @transform_0, window_bounds = array<i64: 64, 16>}, {pipeline_mode = #tpu.pipeline_mode<synchronous>, transform_indices = @transform_1, window_bounds = array<i64: 16, 128>}, {pipeline_mode = #tpu.pipeline_mode<synchronous>, transform_indices = @transform_2, window_bounds = array<i64: 3, 128>}, {pipeline_mode = #tpu.pipeline_mode<synchronous>, transform_indices = @transform_3, window_bounds = array<i64: 128, 256>}, {pipeline_mode = #tpu.pipeline_mode<synchronous>, transform_indices = @transform_4, window_bounds = array<i64: 3, 256>}, {pipeline_mode = #tpu.pipeline_mode<synchronous>, transform_indices = @transform_5, window_bounds = array<i64: 256, 256>}, {pipeline_mode = #tpu.pipeline_mode<synchronous>, transform_indices = @transform_6, window_bounds = array<i64: 3, 256>}, {pipeline_mode = #tpu.pipeline_mode<synchronous>, transform_indices = @transform_7, window_bounds = array<i64: 256, 128>}, {pipeline_mode = #tpu.pipeline_mode<synchronous>, transform_indices = @transform_8, window_bounds = array<i64: 3, 128>}, {pipeline_mode = #tpu.pipeline_mode<synchronous>, transform_indices = @transform_9, window_bounds = array<i64: 128, 128>}, {pipeline_mode = #tpu.pipeline_mode<synchronous>, transform_indices = @transform_10, window_bounds = array<i64: 1, 128>}, {transform_indices = @transform_11, window_bounds = array<i64: 64, 128>}]} {
    %c0 = arith.constant 0 : index
    %c0_0 = arith.constant 0 : index
    %0 = vector.load %arg1[%c0, %c0_0] : memref<64x16xf32, #tpu.memory_space<vmem>>, vector<64x16xf32>
    %c0_1 = arith.constant 0 : index
    %c0_2 = arith.constant 0 : index
    %1 = vector.load %arg3[%c0_1, %c0_2] : memref<3x128xf32, #tpu.memory_space<vmem>>, vector<3x128xf32>
    %c0_3 = arith.constant 0 : index
    %c0_4 = arith.constant 0 : index
    %2 = vector.load %arg2[%c0_3, %c0_4] : memref<16x128xf32, #tpu.memory_space<vmem>>, vector<16x128xf32>
    %cst = arith.constant dense<0.000000e+00> : vector<64x128xf32>
    %3 = tpu.matmul %0, %2, %cst {dimension_numbers = #tpu.dot_dimension_numbers<[1], [0], [0], [1], [0, 0, 1, 1], [], []>} : vector<64x16xf32>, vector<16x128xf32>, vector<64x128xf32> -> vector<64x128xf32>
    %4 = vector.extract_strided_slice %1 {offsets = [0, 0], sizes = [1, 128], strides = [1, 1]} : vector<3x128xf32> to vector<1x128xf32>
    %5 = vector.broadcast %4 : vector<1x128xf32> to vector<64x128xf32>
    %6 = arith.addf %3, %5 : vector<64x128xf32>
    %cst_5 = arith.constant 0.00999999977 : f32
    %7 = vector.broadcast %cst_5 : f32 to vector<64x128xf32>
    %8 = arith.mulf %7, %6 : vector<64x128xf32>
    %9 = arith.maximumf %6, %8 : vector<64x128xf32>
    %cst_6 = arith.constant dense<0.000000e+00> : vector<64xf32>
    %10 = vector.multi_reduction <add>, %9, %cst_6 [1] : vector<64x128xf32> to vector<64xf32>
    %11 = vector.shape_cast %10 : vector<64xf32> to vector<64x1xf32>
    %cst_7 = arith.constant 1.280000e+02 : f32
    %12 = vector.broadcast %cst_7 : f32 to vector<64x1xf32>
    %13 = arith.divf %11, %12 : vector<64x1xf32>
    %14 = vector.broadcast %13 : vector<64x1xf32> to vector<64x128xf32>
    %15 = arith.subf %9, %14 : vector<64x128xf32>
    %16 = arith.mulf %15, %15 : vector<64x128xf32>
    %cst_8 = arith.constant dense<0.000000e+00> : vector<64xf32>
    %17 = vector.multi_reduction <add>, %16, %cst_8 [1] : vector<64x128xf32> to vector<64xf32>
    %18 = vector.shape_cast %17 : vector<64xf32> to vector<64x1xf32>
    %cst_9 = arith.constant 1.280000e+02 : f32
    %19 = vector.broadcast %cst_9 : f32 to vector<64x1xf32>
    %20 = arith.divf %18, %19 : vector<64x1xf32>
    %cst_10 = arith.constant 9.99999974E-6 : f32
    %21 = vector.broadcast %cst_10 : f32 to vector<64x1xf32>
    %22 = arith.addf %20, %21 : vector<64x1xf32>
    %23 = math.rsqrt %22 : vector<64x1xf32>
    %24 = vector.broadcast %23 : vector<64x1xf32> to vector<64x128xf32>
    %25 = arith.mulf %15, %24 : vector<64x128xf32>
    %26 = vector.extract_strided_slice %1 {offsets = [1, 0], sizes = [1, 128], strides = [1, 1]} : vector<3x128xf32> to vector<1x128xf32>
    %27 = vector.broadcast %26 : vector<1x128xf32> to vector<64x128xf32>
    %28 = arith.mulf %25, %27 : vector<64x128xf32>
    %29 = vector.extract_strided_slice %1 {offsets = [2, 0], sizes = [1, 128], strides = [1, 1]} : vector<3x128xf32> to vector<1x128xf32>
    %30 = vector.broadcast %29 : vector<1x128xf32> to vector<64x128xf32>
    %31 = arith.addf %28, %30 : vector<64x128xf32>
    %c0_11 = arith.constant 0 : index
    %c0_12 = arith.constant 0 : index
    %32 = vector.load %arg5[%c0_11, %c0_12] : memref<3x256xf32, #tpu.memory_space<vmem>>, vector<3x256xf32>
    %c0_13 = arith.constant 0 : index
    %c0_14 = arith.constant 0 : index
    %33 = vector.load %arg4[%c0_13, %c0_14] : memref<128x256xf32, #tpu.memory_space<vmem>>, vector<128x256xf32>
    %cst_15 = arith.constant dense<0.000000e+00> : vector<64x256xf32>
    %34 = tpu.matmul %31, %33, %cst_15 {dimension_numbers = #tpu.dot_dimension_numbers<[1], [0], [0], [1], [0, 0, 1, 1], [], []>} : vector<64x128xf32>, vector<128x256xf32>, vector<64x256xf32> -> vector<64x256xf32>
    %35 = vector.extract_strided_slice %32 {offsets = [0, 0], sizes = [1, 256], strides = [1, 1]} : vector<3x256xf32> to vector<1x256xf32>
    %36 = vector.broadcast %35 : vector<1x256xf32> to vector<64x256xf32>
    %37 = arith.addf %34, %36 : vector<64x256xf32>
    %cst_16 = arith.constant 0.00999999977 : f32
    %38 = vector.broadcast %cst_16 : f32 to vector<64x256xf32>
    %39 = arith.mulf %38, %37 : vector<64x256xf32>
    %40 = arith.maximumf %37, %39 : vector<64x256xf32>
    %cst_17 = arith.constant dense<0.000000e+00> : vector<64xf32>
    %41 = vector.multi_reduction <add>, %40, %cst_17 [1] : vector<64x256xf32> to vector<64xf32>
    %42 = vector.shape_cast %41 : vector<64xf32> to vector<64x1xf32>
    %cst_18 = arith.constant 2.560000e+02 : f32
    %43 = vector.broadcast %cst_18 : f32 to vector<64x1xf32>
    %44 = arith.divf %42, %43 : vector<64x1xf32>
    %45 = vector.broadcast %44 : vector<64x1xf32> to vector<64x256xf32>
    %46 = arith.subf %40, %45 : vector<64x256xf32>
    %47 = arith.mulf %46, %46 : vector<64x256xf32>
    %cst_19 = arith.constant dense<0.000000e+00> : vector<64xf32>
    %48 = vector.multi_reduction <add>, %47, %cst_19 [1] : vector<64x256xf32> to vector<64xf32>
    %49 = vector.shape_cast %48 : vector<64xf32> to vector<64x1xf32>
    %cst_20 = arith.constant 2.560000e+02 : f32
    %50 = vector.broadcast %cst_20 : f32 to vector<64x1xf32>
    %51 = arith.divf %49, %50 : vector<64x1xf32>
    %cst_21 = arith.constant 9.99999974E-6 : f32
    %52 = vector.broadcast %cst_21 : f32 to vector<64x1xf32>
    %53 = arith.addf %51, %52 : vector<64x1xf32>
    %54 = math.rsqrt %53 : vector<64x1xf32>
    %55 = vector.broadcast %54 : vector<64x1xf32> to vector<64x256xf32>
    %56 = arith.mulf %46, %55 : vector<64x256xf32>
    %57 = vector.extract_strided_slice %32 {offsets = [1, 0], sizes = [1, 256], strides = [1, 1]} : vector<3x256xf32> to vector<1x256xf32>
    %58 = vector.broadcast %57 : vector<1x256xf32> to vector<64x256xf32>
    %59 = arith.mulf %56, %58 : vector<64x256xf32>
    %60 = vector.extract_strided_slice %32 {offsets = [2, 0], sizes = [1, 256], strides = [1, 1]} : vector<3x256xf32> to vector<1x256xf32>
    %61 = vector.broadcast %60 : vector<1x256xf32> to vector<64x256xf32>
    %62 = arith.addf %59, %61 : vector<64x256xf32>
    %c0_22 = arith.constant 0 : index
    %c0_23 = arith.constant 0 : index
    %63 = vector.load %arg7[%c0_22, %c0_23] : memref<3x256xf32, #tpu.memory_space<vmem>>, vector<3x256xf32>
    %c0_24 = arith.constant 0 : index
    %c0_25 = arith.constant 0 : index
    %64 = vector.load %arg6[%c0_24, %c0_25] : memref<256x256xf32, #tpu.memory_space<vmem>>, vector<256x256xf32>
    %cst_26 = arith.constant dense<0.000000e+00> : vector<64x256xf32>
    %65 = tpu.matmul %62, %64, %cst_26 {dimension_numbers = #tpu.dot_dimension_numbers<[1], [0], [0], [1], [0, 0, 1, 1], [], []>} : vector<64x256xf32>, vector<256x256xf32>, vector<64x256xf32> -> vector<64x256xf32>
    %66 = vector.extract_strided_slice %63 {offsets = [0, 0], sizes = [1, 256], strides = [1, 1]} : vector<3x256xf32> to vector<1x256xf32>
    %67 = vector.broadcast %66 : vector<1x256xf32> to vector<64x256xf32>
    %68 = arith.addf %65, %67 : vector<64x256xf32>
    %cst_27 = arith.constant 0.00999999977 : f32
    %69 = vector.broadcast %cst_27 : f32 to vector<64x256xf32>
    %70 = arith.mulf %69, %68 : vector<64x256xf32>
    %71 = arith.maximumf %68, %70 : vector<64x256xf32>
    %cst_28 = arith.constant dense<0.000000e+00> : vector<64xf32>
    %72 = vector.multi_reduction <add>, %71, %cst_28 [1] : vector<64x256xf32> to vector<64xf32>
    %73 = vector.shape_cast %72 : vector<64xf32> to vector<64x1xf32>
    %cst_29 = arith.constant 2.560000e+02 : f32
    %74 = vector.broadcast %cst_29 : f32 to vector<64x1xf32>
    %75 = arith.divf %73, %74 : vector<64x1xf32>
    %76 = vector.broadcast %75 : vector<64x1xf32> to vector<64x256xf32>
    %77 = arith.subf %71, %76 : vector<64x256xf32>
    %78 = arith.mulf %77, %77 : vector<64x256xf32>
    %cst_30 = arith.constant dense<0.000000e+00> : vector<64xf32>
    %79 = vector.multi_reduction <add>, %78, %cst_30 [1] : vector<64x256xf32> to vector<64xf32>
    %80 = vector.shape_cast %79 : vector<64xf32> to vector<64x1xf32>
    %cst_31 = arith.constant 2.560000e+02 : f32
    %81 = vector.broadcast %cst_31 : f32 to vector<64x1xf32>
    %82 = arith.divf %80, %81 : vector<64x1xf32>
    %cst_32 = arith.constant 9.99999974E-6 : f32
    %83 = vector.broadcast %cst_32 : f32 to vector<64x1xf32>
    %84 = arith.addf %82, %83 : vector<64x1xf32>
    %85 = math.rsqrt %84 : vector<64x1xf32>
    %86 = vector.broadcast %85 : vector<64x1xf32> to vector<64x256xf32>
    %87 = arith.mulf %77, %86 : vector<64x256xf32>
    %88 = vector.extract_strided_slice %63 {offsets = [1, 0], sizes = [1, 256], strides = [1, 1]} : vector<3x256xf32> to vector<1x256xf32>
    %89 = vector.broadcast %88 : vector<1x256xf32> to vector<64x256xf32>
    %90 = arith.mulf %87, %89 : vector<64x256xf32>
    %91 = vector.extract_strided_slice %63 {offsets = [2, 0], sizes = [1, 256], strides = [1, 1]} : vector<3x256xf32> to vector<1x256xf32>
    %92 = vector.broadcast %91 : vector<1x256xf32> to vector<64x256xf32>
    %93 = arith.addf %90, %92 : vector<64x256xf32>
    %c0_33 = arith.constant 0 : index
    %c0_34 = arith.constant 0 : index
    %94 = vector.load %arg9[%c0_33, %c0_34] : memref<3x128xf32, #tpu.memory_space<vmem>>, vector<3x128xf32>
    %c0_35 = arith.constant 0 : index
    %c0_36 = arith.constant 0 : index
    %95 = vector.load %arg8[%c0_35, %c0_36] : memref<256x128xf32, #tpu.memory_space<vmem>>, vector<256x128xf32>
    %cst_37 = arith.constant dense<0.000000e+00> : vector<64x128xf32>
    %96 = tpu.matmul %93, %95, %cst_37 {dimension_numbers = #tpu.dot_dimension_numbers<[1], [0], [0], [1], [0, 0, 1, 1], [], []>} : vector<64x256xf32>, vector<256x128xf32>, vector<64x128xf32> -> vector<64x128xf32>
    %97 = vector.extract_strided_slice %94 {offsets = [0, 0], sizes = [1, 128], strides = [1, 1]} : vector<3x128xf32> to vector<1x128xf32>
    %98 = vector.broadcast %97 : vector<1x128xf32> to vector<64x128xf32>
    %99 = arith.addf %96, %98 : vector<64x128xf32>
    %cst_38 = arith.constant 0.00999999977 : f32
    %100 = vector.broadcast %cst_38 : f32 to vector<64x128xf32>
    %101 = arith.mulf %100, %99 : vector<64x128xf32>
    %102 = arith.maximumf %99, %101 : vector<64x128xf32>
    %cst_39 = arith.constant dense<0.000000e+00> : vector<64xf32>
    %103 = vector.multi_reduction <add>, %102, %cst_39 [1] : vector<64x128xf32> to vector<64xf32>
    %104 = vector.shape_cast %103 : vector<64xf32> to vector<64x1xf32>
    %cst_40 = arith.constant 1.280000e+02 : f32
    %105 = vector.broadcast %cst_40 : f32 to vector<64x1xf32>
    %106 = arith.divf %104, %105 : vector<64x1xf32>
    %107 = vector.broadcast %106 : vector<64x1xf32> to vector<64x128xf32>
    %108 = arith.subf %102, %107 : vector<64x128xf32>
    %109 = arith.mulf %108, %108 : vector<64x128xf32>
    %cst_41 = arith.constant dense<0.000000e+00> : vector<64xf32>
    %110 = vector.multi_reduction <add>, %109, %cst_41 [1] : vector<64x128xf32> to vector<64xf32>
    %111 = vector.shape_cast %110 : vector<64xf32> to vector<64x1xf32>
    %cst_42 = arith.constant 1.280000e+02 : f32
    %112 = vector.broadcast %cst_42 : f32 to vector<64x1xf32>
    %113 = arith.divf %111, %112 : vector<64x1xf32>
    %cst_43 = arith.constant 9.99999974E-6 : f32
    %114 = vector.broadcast %cst_43 : f32 to vector<64x1xf32>
    %115 = arith.addf %113, %114 : vector<64x1xf32>
    %116 = math.rsqrt %115 : vector<64x1xf32>
    %117 = vector.broadcast %116 : vector<64x1xf32> to vector<64x128xf32>
    %118 = arith.mulf %108, %117 : vector<64x128xf32>
    %119 = vector.extract_strided_slice %94 {offsets = [1, 0], sizes = [1, 128], strides = [1, 1]} : vector<3x128xf32> to vector<1x128xf32>
    %120 = vector.broadcast %119 : vector<1x128xf32> to vector<64x128xf32>
    %121 = arith.mulf %118, %120 : vector<64x128xf32>
    %122 = vector.extract_strided_slice %94 {offsets = [2, 0], sizes = [1, 128], strides = [1, 1]} : vector<3x128xf32> to vector<1x128xf32>
    %123 = vector.broadcast %122 : vector<1x128xf32> to vector<64x128xf32>
    %124 = arith.addf %121, %123 : vector<64x128xf32>
    %c0_44 = arith.constant 0 : index
    %c0_45 = arith.constant 0 : index
    %125 = vector.load %arg10[%c0_44, %c0_45] : memref<128x128xf32, #tpu.memory_space<vmem>>, vector<128x128xf32>
    %cst_46 = arith.constant dense<0.000000e+00> : vector<64x128xf32>
    %126 = tpu.matmul %124, %125, %cst_46 {dimension_numbers = #tpu.dot_dimension_numbers<[1], [0], [0], [1], [0, 0, 1, 1], [], []>} : vector<64x128xf32>, vector<128x128xf32>, vector<64x128xf32> -> vector<64x128xf32>
    %c0_47 = arith.constant 0 : index
    %c0_48 = arith.constant 0 : index
    %127 = vector.load %arg11[%c0_47, %c0_48] : memref<1x128xf32, #tpu.memory_space<vmem>>, vector<1x128xf32>
    %128 = vector.broadcast %127 : vector<1x128xf32> to vector<64x128xf32>
    %129 = arith.addf %126, %128 : vector<64x128xf32>
    %c0_49 = arith.constant 0 : index
    %c0_50 = arith.constant 0 : index
    %130 = vector.load %arg12[%c0_49, %c0_50] : memref<64x128xf32, #tpu.memory_space<vmem>>, vector<64x128xf32>
    tpu.vector_store %arg12[%c0_49, %c0_50], %129 {strides = array<i32>} : memref<64x128xf32, #tpu.memory_space<vmem>>, vector<64x128xf32>,
    return
  }
  func.func @transform_0(%arg0: i32) -> (i32, i32) {
    %c0_i32 = arith.constant 0 : i32
    %c0_i32_0 = arith.constant 0 : i32
    return %arg0, %c0_i32 : i32, i32
  }
  func.func @transform_1(%arg0: i32) -> (i32, i32) {
    %c0_i32 = arith.constant 0 : i32
    %c0_i32_0 = arith.constant 0 : i32
    %c0_i32_1 = arith.constant 0 : i32
    return %c0_i32, %c0_i32_0 : i32, i32
  }
  func.func @transform_2(%arg0: i32) -> (i32, i32) {
    %c0_i32 = arith.constant 0 : i32
    %c0_i32_0 = arith.constant 0 : i32
    %c0_i32_1 = arith.constant 0 : i32
    return %c0_i32, %c0_i32_0 : i32, i32
  }
  func.func @transform_3(%arg0: i32) -> (i32, i32) {
    %c0_i32 = arith.constant 0 : i32
    %c0_i32_0 = arith.constant 0 : i32
    %c0_i32_1 = arith.constant 0 : i32
    return %c0_i32, %c0_i32_0 : i32, i32
  }
  func.func @transform_4(%arg0: i32) -> (i32, i32) {
    %c0_i32 = arith.constant 0 : i32
    %c0_i32_0 = arith.constant 0 : i32
    %c0_i32_1 = arith.constant 0 : i32
    return %c0_i32, %c0_i32_0 : i32, i32
  }
  func.func @transform_5(%arg0: i32) -> (i32, i32) {
    %c0_i32 = arith.constant 0 : i32
    %c0_i32_0 = arith.constant 0 : i32
    %c0_i32_1 = arith.constant 0 : i32
    return %c0_i32, %c0_i32_0 : i32, i32
  }
  func.func @transform_6(%arg0: i32) -> (i32, i32) {
    %c0_i32 = arith.constant 0 : i32
    %c0_i32_0 = arith.constant 0 : i32
    %c0_i32_1 = arith.constant 0 : i32
    return %c0_i32, %c0_i32_0 : i32, i32
  }
  func.func @transform_7(%arg0: i32) -> (i32, i32) {
    %c0_i32 = arith.constant 0 : i32
    %c0_i32_0 = arith.constant 0 : i32
    %c0_i32_1 = arith.constant 0 : i32
    return %c0_i32, %c0_i32_0 : i32, i32
  }
  func.func @transform_8(%arg0: i32) -> (i32, i32) {
    %c0_i32 = arith.constant 0 : i32
    %c0_i32_0 = arith.constant 0 : i32
    %c0_i32_1 = arith.constant 0 : i32
    return %c0_i32, %c0_i32_0 : i32, i32
  }
  func.func @transform_9(%arg0: i32) -> (i32, i32) {
    %c0_i32 = arith.constant 0 : i32
    %c0_i32_0 = arith.constant 0 : i32
    %c0_i32_1 = arith.constant 0 : i32
    return %c0_i32, %c0_i32_0 : i32, i32
  }
  func.func @transform_10(%arg0: i32) -> (i32, i32) {
    %c0_i32 = arith.constant 0 : i32
    %c0_i32_0 = arith.constant 0 : i32
    %c0_i32_1 = arith.constant 0 : i32
    return %c0_i32, %c0_i32_0 : i32, i32
  }
  func.func @transform_11(%arg0: i32) -> (i32, i32) {
    %c0_i32 = arith.constant 0 : i32
    %c0_i32_0 = arith.constant 0 : i32
    return %arg0, %c0_i32 : i32, i32
  }
}

</mosaic_0001>

<bundles_post_ra>
// kernel: nn_5_2_forward.1
= control target key start
LH: loop header
LB: loop body
LE: loop exit
PB: predicated region body
PF: predicated region fallthrough
CT: control target
= control target key end

     0   :  { %16 = vsyncpa [#allocation3], 0  ;;  %s2839_s0 = inlined_call_operand.vmem [shape: f32[64,16], index: 0, kind: input, shape index: {}]   ;;  %s2840_s1 = inlined_call_operand.vmem [shape: f32[16,128], index: 1, kind: input, shape index: {}]   ;;  %s2841_s2 = inlined_call_operand.vmem [shape: f32[3,128], index: 2, kind: input, shape index: {}]   ;;  %s2842_s3 = inlined_call_operand.hbm [shape: f32[128,256], index: 3, kind: input, shape index: {}]   ;;  %s2843_s4 = inlined_call_operand.vmem [shape: f32[3,256], index: 4, kind: input, shape index: {}]   ;;  %s2844_s5 = inlined_call_operand.vmem [shape: f32[256,256], index: 5, kind: input, shape index: {}]   ;;  %s2845_s6 = inlined_call_operand.vmem [shape: f32[3,256], index: 6, kind: input, shape index: {}]   ;;  %s2846_s7 = inlined_call_operand.hbm [shape: f32[256,128], index: 7, kind: input, shape index: {}]   ;;  %s2847_s8 = inlined_call_operand.vmem [shape: f32[3,128], index: 8, kind: input, shape index: {}]   ;;  %s2848_s9 = inlined_call_operand.vmem [shape: f32[128,128], index: 9, kind: input, shape index: {}]   ;;  %s2849_s10 = inlined_call_operand.vmem [shape: f32[1,128], index: 10, kind: input, shape index: {}]   ;;  %s2850_s11 = inlined_call_operand.vmem [shape: f32[64,128], index: 11, kind: output, shape index: {}]  }
   0x1   :  { %17 = vsyncpa [#allocation5], 0  ;;  %s1877_s17 = smov [#allocation2]  }
   0x2   :  { %s29_s18 = sshll.u32 %s1877_s17, 4  ;;  %s30_s18 = int_to_ptr.vmem [resolvable:$true] %s29_s18 }
   0x3   :  { %s1841_s19 = scalar_lea.vmem %s30_s18, 4096  ;;  %p1846_p1 = scmp.lt.s32.totalorder %s30_s18, %s30_s18 }
   0x4   :  { %p1842_p0 = scmp.ne.s32.totalorder %s30_s18, %s1841_s19  ;;  %p1847_p2 = scmp.lt.s32.totalorder %s1841_s19, %s1841_s19 }
   0x6   :  { %p1848_p3 = por %p1847_p2, %p1846_p1 }
   0x8   :  { %p1849_p4 = pnand %p1848_p3, %p1842_p0 }
   0xa   :  { %1852 = shalt.err (!%p1849_p4)
}
   0xb   :  { %s1878_s20 = smov 256   ;;  %s1879_s21 = smov 16  }
   0xc   :  { %35 = dma.hbm_to_vmem [thread:$0]  %s2842_s3, 4096, %s30_s18, [#allocation3], %s1878_s20, %s1878_s20, %s1879_s21  }
   0xd   :  { %s1880_s24 = smov [#allocation4]  }
   0xe   :  { %s47_s25 = sshll.u32 %s1880_s24, 4  ;;  %s48_s25 = int_to_ptr.vmem [resolvable:$true] %s47_s25 }
   0xf   :  { %s1861_s26 = scalar_lea.vmem %s48_s25, 4096  ;;  %p1866_p6 = scmp.lt.s32.totalorder %s48_s25, %s48_s25 }
  0x10   :  { %p1862_p5 = scmp.ne.s32.totalorder %s48_s25, %s1861_s26  ;;  %p1867_p7 = scmp.lt.s32.totalorder %s1861_s26, %s1861_s26 }
  0x12   :  { %p1868_p8 = por %p1867_p7, %p1866_p6 }
  0x14   :  { %p1869_p9 = pnand %p1868_p8, %p1862_p5 }
  0x16   :  { %1872 = shalt.err (!%p1869_p9)
}
  0x17   :  { %s1881_s27 = smov 128   ;;  %s1882_s28 = smov 8  }
  0x18   :  { %53 = dma.hbm_to_vmem [thread:$0]  %s2846_s7, 4096, %s48_s25, [#allocation5], %s1881_s27, %s1881_s27, %s1882_s28  }
  0x19   :  { %1873 = dma.done.wait [#allocation3], 4096  }
  0x1a   :  { %1874 = vsyncadd [#allocation3], 4294963200 }
  0x1b   :  { %1875 = dma.done.wait [#allocation5], 4096  }
  0x1c   :  { %1876 = vsyncadd [#allocation5], 4294963200  ;;  %vm81_vm0 = vcmask 130048   ;;  %v76_v0 = vld [vmem:[%s2840_s1 + $0x8] sm:$0xff]  ;;  %v75_v1 = vld [vmem:[%s2840_s1] sm:$0xff]  ;;  %v77_v10 = vlaneseq }
  0x1d   :  { %v66_v2 = vld [vmem:[%s2839_s0] sm:$0xff]  ;;  %1670 = vmatprep.subr.mxu0 %v76_v0  ;;  %v67_v3 = vld [vmem:[%s2839_s0 + $0x8] sm:$0xff]  ;;  %v68_v4 = vld [vmem:[%s2839_s0 + $0x10] sm:$0xff] }
  0x1e   :  { %1674 = vmatprep.mubr.msk.f32.mxu0 %vm81_vm0, %v66_v2  ;;  %1671 = vmatpush3.msra.mxu0 %v76_v0  ;;  %v69_v5 = vld [vmem:[%s2839_s0 + $0x18] sm:$0xff]  ;;  %v70_v6 = vld [vmem:[%s2839_s0 + $0x20] sm:$0xff]  ;;  %v71_v7 = vld [vmem:[%s2839_s0 + $0x28] sm:$0xff]  ;;  %v1988_v11 = vshrl.u32 %v77_v10, 7 }
  0x1f   :  { %1672 = vmatprep.subr.mxu0 %v75_v1  ;;  %v72_v8 = vld [vmem:[%s2839_s0 + $0x30] sm:$0xff]  ;;  %v73_v9 = vld [vmem:[%s2839_s0 + $0x38] sm:$0xff]  ;;  %v1996_v13 = vld [vmem:[%s2841_s2] sm:$0x7] }
  0x20   :  { %1673 = vmatpush3.msra.mxu0 %v75_v1  ;;  %v1991_v12 = vsub.s32 0, %v1988_v11  ;;  %v372_v47 = vld [vmem:[#allocation2 + $0xf8] sm:$0xff]  ;;  %v371_v48 = vld [vmem:[#allocation2 + $0xf0] sm:$0xff]  ;;  %v370_v49 = vld [vmem:[#allocation2 + $0xe8] sm:$0xff] }
  0x21   :  { %1675 = vmatmul.mubr.msk.f32.vlgmr.msra.gmra.mxu0 %vm81_vm0, %v67_v3  ;;  %392 = vmatprep.subr.mxu1 %v372_v47  ;;  %v369_v50 = vld [vmem:[#allocation2 + $0xe0] sm:$0xff]  ;;  %v368_v51 = vld [vmem:[#allocation2 + $0xd8] sm:$0xff]  ;;  %v367_v52 = vld [vmem:[#allocation2 + $0xd0] sm:$0xff] }
  0x22   :  { %1677 = vmatprep.mubr.msk.f32.mxu0 %vm81_vm0, %v68_v4  ;;  %v80_v14 = vrot.slane %v1996_v13, %v1991_v12  ;;  %393 = vmatpush1.msra.mxu1 %v371_v48  ;;  %v366_v53 = vld [vmem:[#allocation2 + $0xc8] sm:$0xff]  ;;  %v365_v54 = vld [vmem:[#allocation2 + $0xc0] sm:$0xff]  ;;  %v343_v47 = vld [vmem:[#allocation2 + $0x10] sm:$0xff] }
  0x23   :  { %394 = vmatprep.subr.mxu1 %v370_v49  ;;  %v342_v48 = vld [vmem:[#allocation2 + $0x8] sm:$0xff]  ;;  %v341_v49 = vld [vmem:[#allocation2] sm:$0xff] }
  0x24   :  { %395 = vmatpush1.msra.mxu1 %v369_v50  ;;  %v1883_v50 = vmov 0.0  }
  0x25   :  { %1678 = vmatmul.mubr.msk.f32.gmra.mxu0 %vm81_vm0, %v69_v5  ;;  %396 = vmatprep.subr.mxu1 %v368_v51 }
  0x26   :  { %1680 = vmatprep.mubr.msk.f32.mxu0 %vm81_vm0, %v70_v6  ;;  %397 = vmatpush1.msra.mxu1 %v367_v52 }
  0x27   :  { %398 = vmatprep.subr.mxu1 %v366_v53  ;;  %456 = vmatprep.mubr.f32.mxu1 %v1883_v50 }
  0x28   :  { %399 = vmatpush1.msra.mxu1 %v365_v54 }
  0x29   :  { %1681 = vmatmul.mubr.msk.f32.gmra.mxu0 %vm81_vm0, %v71_v7 }
  0x2a   :  { %1683 = vmatprep.mubr.msk.f32.mxu0 %vm81_vm0, %v72_v8 }
  0x2d   :  { %1684 = vmatmul.mubr.msk.f32.gmra.mxu0 %vm81_vm0, %v73_v9 }
  0xe1   :  { %v1676_v15 = vpop.f32.mrf.mxu0 }
  0xe2   :  { %v178_v17 = vadd.f32 %v1676_v15, %v80_v14 }
  0xe3   :  { %v172_v16 = vpop.f32.mrf.mxu0 }
  0xe4   :  { %v173_v18 = vadd.f32 %v172_v16, %v80_v14  ;;  %v212_v22 = vmul.f32 0.01, %v178_v17 }
  0xe5   :  { %v1679_v19 = vpop.f32.mrf.mxu0 }
  0xe6   :  { %v211_v20 = vmul.f32 0.01, %v173_v18  ;;  %v188_v23 = vadd.f32 %v1679_v19, %v80_v14  ;;  %v220_v33 = vmax.f32 %v178_v17, %v212_v22 }
  0xe7   :  { %v182_v21 = vpop.f32.mrf.mxu0 }
  0xe8   :  { %v183_v24 = vadd.f32 %v182_v21, %v80_v14  ;;  %v219_v25 = vmax.f32 %v173_v18, %v211_v20  ;;  %v214_v30 = vmul.f32 0.01, %v188_v23  ;;  %v364_v21 = vld [vmem:[#allocation2 + $0xb8] sm:$0xff] }
  0xe9   :  { %v1682_v26 = vpop.f32.mrf.mxu0  ;;  %400 = vmatprep.subr.mxu1 %v364_v21 }
  0xea   :  { %v213_v27 = vmul.f32 0.01, %v183_v24  ;;  %v198_v28 = vadd.f32 %v1682_v26, %v80_v14  ;;  %227 = vadd.xlane.f32.xlu0 %v219_v25  ;;  %v222_v40 = vmax.f32 %v188_v23, %v214_v30  ;;  %v362_v26 = vld [vmem:[#allocation2 + $0xa8] sm:$0xff]  ;;  %v360_v30 = vld [vmem:[#allocation2 + $0x98] sm:$0xff] }
  0xeb   :  { %v192_v29 = vpop.f32.mrf.mxu0 }
  0xec   :  { %v193_v31 = vadd.f32 %v192_v29, %v80_v14  ;;  %v221_v32 = vmax.f32 %v183_v24, %v213_v27  ;;  %v216_v35 = vmul.f32 0.01, %v198_v28 }
  0xed   :  { %v1685_v34 = vpop.f32.mrf.mxu0 }
  0xee   :  { %v215_v36 = vmul.f32 0.01, %v193_v31  ;;  %v208_v37 = vadd.f32 %v1685_v34, %v80_v14  ;;  %231 = vadd.xlane.f32.xlu1 %v221_v32  ;;  %229 = vadd.xlane.f32.xlu0 %v220_v33  ;;  %v224_v44 = vmax.f32 %v198_v28, %v216_v35  ;;  %v361_v28 = vld [vmem:[#allocation2 + $0xa0] sm:$0xff]  ;;  %v356_v34 = vld [vmem:[#allocation2 + $0x78] sm:$0xff]  ;;  %v355_v35 = vld [vmem:[#allocation2 + $0x70] sm:$0xff] }
  0xef   :  { %v202_v38 = vpop.f32.mrf.mxu0 }
  0xf0   :  { %v203_v39 = vadd.f32 %v202_v38, %v80_v14  ;;  %v223_v41 = vmax.f32 %v193_v31, %v215_v36  ;;  %v218_v42 = vmul.f32 0.01, %v208_v37  ;;  %v359_v31 = vld [vmem:[#allocation2 + $0x90] sm:$0xff]  ;;  %v354_v36 = vld [vmem:[#allocation2 + $0x68] sm:$0xff]  ;;  %v352_v38 = vld [vmem:[#allocation2 + $0x58] sm:$0xff] }
  0xf2   :  { %v217_v43 = vmul.f32 0.01, %v203_v39  ;;  %233 = vadd.xlane.f32.xlu1 %v222_v40  ;;  %235 = vadd.xlane.f32.xlu0 %v223_v41  ;;  %v226_v46 = vmax.f32 %v208_v37, %v218_v42  ;;  %v353_v37 = vld [vmem:[#allocation2 + $0x60] sm:$0xff]  ;;  %v348_v42 = vld [vmem:[#allocation2 + $0x38] sm:$0xff] }
  0xf4   :  { %v225_v45 = vmax.f32 %v203_v39, %v217_v43  ;;  %v351_v39 = vld [vmem:[#allocation2 + $0x50] sm:$0xff] }
  0xf5   :  { %v347_v43 = vld [vmem:[#allocation2 + $0x30] sm:$0xff] }
  0xf6   :  { %237 = vadd.xlane.f32.xlu1 %v224_v44  ;;  %239 = vadd.xlane.f32.xlu0 %v225_v45 }
  0xfa   :  { %241 = vadd.xlane.f32.xlu1 %v226_v46 }
 0x173   :  { %v228_v55 = vpop.xlane.xlu0 %227 }
 0x174   :  { %v244_v56 = vmul.f32 0.0078125, %v228_v55 }
 0x176   :  { %v2000_v57 = vsub.f32 %v219_v25, %v244_v56  ;;  %v363_v25 = vld [vmem:[#allocation2 + $0xb0] sm:$0xff] }
 0x177   :  { %v232_v58 = vpop.xlane.xlu1 %231  ;;  %v230_v59 = vpop.xlane.xlu0 %229  ;;  %401 = vmatpush1.msra.mxu1 %v363_v25 }
 0x178   :  { %v246_v60 = vmul.f32 0.0078125, %v232_v58  ;;  %v245_v61 = vmul.f32 0.0078125, %v230_v59  ;;  %v260_v62 = vmul.f32 %v2000_v57, %v2000_v57  ;;  %402 = vmatprep.subr.mxu1 %v362_v26 }
 0x179   :  { %403 = vmatpush1.msra.mxu1 %v361_v28 }
 0x17a   :  { %v2004_v63 = vsub.f32 %v221_v32, %v246_v60  ;;  %v2006_v0 = vsub.f32 %v220_v33, %v245_v61  ;;  %268 = vadd.xlane.f32.xlu0 %v260_v62  ;;  %404 = vmatprep.subr.mxu1 %v360_v30  ;;  %v358_v32 = vld [vmem:[#allocation2 + $0x88] sm:$0xff]  ;;  %v357_v33 = vld [vmem:[#allocation2 + $0x80] sm:$0xff] }
 0x17b   :  { %v234_v1 = vpop.xlane.xlu1 %233  ;;  %v236_v2 = vpop.xlane.xlu0 %235  ;;  %405 = vmatpush1.msra.mxu1 %v359_v31 }
 0x17c   :  { %v247_v3 = vmul.f32 0.0078125, %v234_v1  ;;  %v248_v4 = vmul.f32 0.0078125, %v236_v2  ;;  %v262_v5 = vmul.f32 %v2004_v63, %v2004_v63  ;;  %v261_v6 = vmul.f32 %v2006_v0, %v2006_v0  ;;  %406 = vmatprep.subr.mxu1 %v358_v32 }
 0x17d   :  { %407 = vmatpush1.msra.mxu1 %v357_v33 }
 0x17e   :  { %v2012_v7 = vsub.f32 %v222_v40, %v247_v3  ;;  %v2014_v8 = vsub.f32 %v223_v41, %v248_v4  ;;  %272 = vadd.xlane.f32.xlu0 %v262_v5  ;;  %270 = vadd.xlane.f32.xlu1 %v261_v6  ;;  %v350_v40 = vld [vmem:[#allocation2 + $0x48] sm:$0xff]  ;;  %v349_v41 = vld [vmem:[#allocation2 + $0x40] sm:$0xff] }
 0x17f   :  { %v238_v9 = vpop.xlane.xlu1 %237  ;;  %v240_v10 = vpop.xlane.xlu0 %239  ;;  %408 = vmatprep.subr.mxu1 %v356_v34 }
 0x180   :  { %v249_v14 = vmul.f32 0.0078125, %v238_v9  ;;  %v250_v15 = vmul.f32 0.0078125, %v240_v10  ;;  %v263_v16 = vmul.f32 %v2012_v7, %v2012_v7  ;;  %v264_v17 = vmul.f32 %v2014_v8, %v2014_v8  ;;  %409 = vmatpush1.msra.mxu1 %v355_v35 }
 0x181   :  { %410 = vmatprep.subr.mxu1 %v354_v36  ;;  %v2034_v9 = vsub.s32 1, %v1988_v11 }
 0x182   :  { %v2020_v18 = vsub.f32 %v224_v44, %v249_v14  ;;  %v2022_v19 = vsub.f32 %v225_v45, %v250_v15  ;;  %274 = vadd.xlane.f32.xlu1 %v263_v16  ;;  %276 = vadd.xlane.f32.xlu0 %v264_v17  ;;  %v346_v44 = vld [vmem:[#allocation2 + $0x28] sm:$0xff]  ;;  %v345_v45 = vld [vmem:[#allocation2 + $0x20] sm:$0xff]  ;;  %v2037_v14 = vsub.s32 2, %v1988_v11 }
 0x183   :  { %v242_v20 = vpop.xlane.xlu1 %241  ;;  %411 = vmatpush1.msra.mxu1 %v353_v37 }
 0x184   :  { %v251_v22 = vmul.f32 0.0078125, %v242_v20  ;;  %v265_v23 = vmul.f32 %v2020_v18, %v2020_v18  ;;  %v266_v24 = vmul.f32 %v2022_v19, %v2022_v19  ;;  %412 = vmatprep.subr.mxu1 %v352_v38  ;;  %v319_v20 = vrot.slane %v1996_v13, %v2034_v9 }
 0x185   :  { %413 = vmatpush1.msra.mxu1 %v351_v39 }
 0x186   :  { %v2028_v27 = vsub.f32 %v226_v46, %v251_v22  ;;  %278 = vadd.xlane.f32.xlu1 %v265_v23  ;;  %280 = vadd.xlane.f32.xlu0 %v266_v24  ;;  %v344_v46 = vld [vmem:[#allocation2 + $0x18] sm:$0xff]  ;;  %v331_v22 = vrot.slane %v1996_v13, %v2037_v14 }
 0x187   :  { %414 = vmatprep.subr.mxu1 %v350_v40 }
 0x188   :  { %v267_v29 = vmul.f32 %v2028_v27, %v2028_v27  ;;  %415 = vmatpush1.msra.mxu1 %v349_v41 }
 0x189   :  { %416 = vmatprep.subr.mxu1 %v348_v42 }
 0x18a   :  { %282 = vadd.xlane.f32.xlu1 %v267_v29  ;;  %417 = vmatpush1.msra.mxu1 %v347_v43 }
 0x18b   :  { %418 = vmatprep.subr.mxu1 %v346_v44 }
 0x18c   :  { %419 = vmatpush1.msra.mxu1 %v345_v45 }
 0x18d   :  { %420 = vmatprep.subr.mxu1 %v344_v46 }
 0x18e   :  { %421 = vmatpush1.msra.mxu1 %v343_v47 }
 0x18f   :  { %422 = vmatprep.subr.mxu1 %v342_v48 }
 0x190   :  { %423 = vmatpush1.msra.mxu1 %v341_v49 }
 0x203   :  { %v269_v51 = vpop.xlane.xlu0 %268 }
 0x204   :  { %v284_v52 = vmul.f32 0.0078125, %v269_v51 }
 0x206   :  { %v292_v53 = vadd.f32 1e-05, %v284_v52  ;;  %v380_v52 = vsub.s32 4, %v1988_v11 }
 0x207   :  { %v271_v54 = vpop.xlane.xlu1 %270  ;;  %v273_v55 = vpop.xlane.xlu0 %272 }
 0x208   :  { %1769 = vrsqrt.f32 %v292_v53  ;;  %v285_v56 = vmul.f32 0.0078125, %v271_v54  ;;  %v286_v58 = vmul.f32 0.0078125, %v273_v55 }
 0x20a   :  { %v293_v59 = vadd.f32 1e-05, %v285_v56  ;;  %v294_v60 = vadd.f32 1e-05, %v286_v58 }
 0x20b   :  { %v275_v61 = vpop.xlane.xlu1 %274  ;;  %v277_v62 = vpop.xlane.xlu0 %276 }
 0x20c   :  { %1771 = vrsqrt.f32 %v293_v59  ;;  %v287_v1 = vmul.f32 0.0078125, %v275_v61  ;;  %v288_v2 = vmul.f32 0.0078125, %v277_v62 }
 0x20d   :  { %1773 = vrsqrt.f32 %v294_v60 }
 0x20e   :  { %v295_v3 = vadd.f32 1e-05, %v287_v1  ;;  %v296_v4 = vadd.f32 1e-05, %v288_v2 }
 0x20f   :  { %v279_v5 = vpop.xlane.xlu1 %278  ;;  %v281_v6 = vpop.xlane.xlu0 %280 }
 0x210   :  { %1775 = vrsqrt.f32 %v295_v3  ;;  %v289_v10 = vmul.f32 0.0078125, %v279_v5  ;;  %v290_v16 = vmul.f32 0.0078125, %v281_v6 }
 0x211   :  { %1777 = vrsqrt.f32 %v296_v4 }
 0x212   :  { %v297_v15 = vadd.f32 1e-05, %v289_v10  ;;  %v298_v23 = vadd.f32 1e-05, %v290_v16 }
 0x213   :  { %v283_v17 = vpop.xlane.xlu1 %282 }
 0x214   :  { %1779 = vrsqrt.f32 %v297_v15  ;;  %v291_v24 = vmul.f32 0.0078125, %v283_v17 }
 0x215   :  { %v1770_v21 = vpop.eup %1769  ;;  %1781 = vrsqrt.f32 %v298_v23 }
 0x216   :  { %v308_v25 = vmul.f32 %v1770_v21, %v2000_v57  ;;  %v299_v30 = vadd.f32 1e-05, %v291_v24 }
 0x218   :  { %v320_v26 = vmul.f32 %v319_v20, %v308_v25  ;;  %1783 = vrsqrt.f32 %v299_v30 }
 0x219   :  { %v1772_v28 = vpop.eup %1771 }
 0x21a   :  { %v1774_v29 = vpop.eup %1773  ;;  %v332_v31 = vadd.f32 %v331_v22, %v320_v26  ;;  %v309_v32 = vmul.f32 %v1772_v28, %v2006_v0 }
 0x21b   :  { %v310_v33 = vmul.f32 %v1774_v29, %v2004_v63 }
 0x21c   :  { %457 = vmatmul.mubr.f32.vlgmr.msra.gmra.mxu1 %v332_v31  ;;  %v321_v34 = vmul.f32 %v319_v20, %v309_v32 }
 0x21d   :  { %v1776_v35 = vpop.eup %1775  ;;  %462 = vmatprep.mubr.f32.mxu1 %v1883_v50  ;;  %v322_v36 = vmul.f32 %v319_v20, %v310_v33 }
 0x21e   :  { %v333_v13 = vadd.f32 %v331_v22, %v321_v34  ;;  %v311_v57 = vmul.f32 %v1776_v35, %v2012_v7  ;;  %v1778_v37 = vpop.eup %1777 }
 0x21f   :  { %v334_v38 = vadd.f32 %v331_v22, %v322_v36  ;;  %v312_v0 = vmul.f32 %v1778_v37, %v2014_v8 }
 0x220   :  { %463 = vmatmul.mubr.f32.gmra.mxu1 %v333_v13  ;;  %v323_v39 = vmul.f32 %v319_v20, %v311_v57 }
 0x221   :  { %468 = vmatprep.mubr.f32.mxu1 %v1883_v50  ;;  %v1780_v40 = vpop.eup %1779  ;;  %v324_v41 = vmul.f32 %v319_v20, %v312_v0 }
 0x222   :  { %v335_v63 = vadd.f32 %v331_v22, %v323_v39  ;;  %v313_v42 = vmul.f32 %v1780_v40, %v2020_v18  ;;  %v1782_v43 = vpop.eup %1781 }
 0x223   :  { %v336_v7 = vadd.f32 %v331_v22, %v324_v41  ;;  %v314_v45 = vmul.f32 %v1782_v43, %v2022_v19  ;;  %v2061_v19 = vld [vmem:[%s2843_s4] sm:$0x77] }
 0x224   :  { %469 = vmatmul.mubr.f32.gmra.mxu1 %v334_v38  ;;  %v325_v44 = vmul.f32 %v319_v20, %v313_v42  ;;  %v381_v53 = vrot.slane %v2061_v19, %v380_v52 }
 0x225   :  { %474 = vmatprep.mubr.f32.mxu1 %v1883_v50  ;;  %v1784_v46 = vpop.eup %1783  ;;  %v326_v47 = vmul.f32 %v319_v20, %v314_v45 }
 0x226   :  { %v337_v8 = vadd.f32 %v331_v22, %v325_v44  ;;  %v315_v48 = vmul.f32 %v1784_v46, %v2028_v27  ;;  %v377_v27 = vrot.slane %v2061_v19, %v1991_v12 }
 0x227   :  { %v338_v18 = vadd.f32 %v331_v22, %v326_v47 }
 0x228   :  { %475 = vmatmul.mubr.f32.gmra.mxu1 %v335_v63  ;;  %v327_v49 = vmul.f32 %v319_v20, %v315_v48  ;;  %v2070_v54 = vrot.slane %v377_v27, %v1991_v12 }
 0x229   :  { %480 = vmatprep.mubr.f32.mxu1 %v1883_v50 }
 0x22a   :  { %v339_v51 = vadd.f32 %v331_v22, %v327_v49 }
 0x22c   :  { %481 = vmatmul.mubr.f32.gmra.mxu1 %v336_v7 }
 0x22d   :  { %486 = vmatprep.mubr.f32.mxu1 %v1883_v50 }
 0x230   :  { %487 = vmatmul.mubr.f32.gmra.mxu1 %v337_v8 }
 0x231   :  { %492 = vmatprep.mubr.f32.mxu1 %v1883_v50 }
 0x234   :  { %493 = vmatmul.mubr.f32.gmra.mxu1 %v338_v18 }
 0x235   :  { %498 = vmatprep.mubr.f32.mxu1 %v1883_v50  ;;  %v2073_v50 = vrot.slane %v381_v53, %v1991_v12 }
 0x238   :  { %499 = vmatmul.mubr.f32.gmra.mxu1 %v339_v51 }
 0x2dc   :  { %v458_v55 = vpop.f32.mrf.mxu1 }
 0x2dd   :  { %v459_v56 = vadd.f32 %v458_v55, %v2070_v54 }
 0x2de   :  { %v460_v58 = vpop.f32.mrf.mxu1 }
 0x2df   :  { %v505_v59 = vmul.f32 0.01, %v459_v56  ;;  %v461_v60 = vadd.f32 %v460_v58, %v2073_v50 }
 0x2e0   :  { %v464_v61 = vpop.f32.mrf.mxu1 }
 0x2e1   :  { %v506_v62 = vmul.f32 0.01, %v461_v60  ;;  %v465_v1 = vadd.f32 %v464_v61, %v2070_v54  ;;  %v2078_v3 = vmax.f32 %v459_v56, %v505_v59 }
 0x2e2   :  { %v466_v2 = vpop.f32.mrf.mxu1 }
 0x2e3   :  { %v2080_v4 = vmax.f32 %v461_v60, %v506_v62  ;;  %v507_v5 = vmul.f32 0.01, %v465_v1  ;;  %v467_v6 = vadd.f32 %v466_v2, %v2073_v50 }
 0x2e4   :  { %v470_v10 = vpop.f32.mrf.mxu1 }
 0x2e5   :  { %v508_v15 = vmul.f32 0.01, %v467_v6  ;;  %v471_v16 = vadd.f32 %v470_v10, %v2070_v54  ;;  %v537_v17 = vadd.f32 %v2080_v4, %v2078_v3  ;;  %v2086_v21 = vmax.f32 %v465_v1, %v507_v5 }
 0x2e6   :  { %v472_v20 = vpop.f32.mrf.mxu1 }
 0x2e7   :  { %v2088_v22 = vmax.f32 %v467_v6, %v508_v15  ;;  %v509_v23 = vmul.f32 0.01, %v471_v16  ;;  %v473_v24 = vadd.f32 %v472_v20, %v2073_v50  ;;  %538 = vadd.xlane.f32.xlu0 %v537_v17  ;;  %v766_v20 = vld [vmem:[%s2844_s5 + $0xf8] sm:$0xff] }
 0x2e8   :  { %v476_v25 = vpop.f32.mrf.mxu1  ;;  %818 = vmatprep.subr.mxu0 %v766_v20 }
 0x2e9   :  { %v510_v26 = vmul.f32 0.01, %v473_v24  ;;  %v477_v28 = vadd.f32 %v476_v25, %v2070_v54  ;;  %v540_v29 = vadd.f32 %v2088_v22, %v2086_v21  ;;  %v2094_v31 = vmax.f32 %v471_v16, %v509_v23  ;;  %v764_v23 = vld [vmem:[%s2844_s5 + $0xe8] sm:$0xff]  ;;  %v762_v25 = vld [vmem:[%s2844_s5 + $0xd8] sm:$0xff] }
 0x2ea   :  { %v478_v30 = vpop.f32.mrf.mxu1 }
 0x2eb   :  { %v2096_v32 = vmax.f32 %v473_v24, %v510_v26  ;;  %v511_v33 = vmul.f32 0.01, %v477_v28  ;;  %v479_v34 = vadd.f32 %v478_v30, %v2073_v50  ;;  %541 = vadd.xlane.f32.xlu1 %v540_v29  ;;  %v763_v24 = vld [vmem:[%s2844_s5 + $0xe0] sm:$0xff]  ;;  %v761_v26 = vld [vmem:[%s2844_s5 + $0xd0] sm:$0xff]  ;;  %v758_v30 = vld [vmem:[%s2844_s5 + $0xb8] sm:$0xff] }
 0x2ec   :  { %v482_v35 = vpop.f32.mrf.mxu1  ;;  %v759_v29 = vld [vmem:[%s2844_s5 + $0xc0] sm:$0xff] }
 0x2ed   :  { %v512_v13 = vmul.f32 0.01, %v479_v34  ;;  %v483_v36 = vadd.f32 %v482_v35, %v2070_v54  ;;  %v543_v57 = vadd.f32 %v2096_v32, %v2094_v31  ;;  %v2102_v38 = vmax.f32 %v477_v28, %v511_v33  ;;  %v760_v28 = vld [vmem:[%s2844_s5 + $0xc8] sm:$0xff]  ;;  %v757_v33 = vld [vmem:[%s2844_s5 + $0xb0] sm:$0xff]  ;;  %v755_v35 = vld [vmem:[%s2844_s5 + $0xa0] sm:$0xff] }
 0x2ee   :  { %v484_v37 = vpop.f32.mrf.mxu1 }
 0x2ef   :  { %v2104_v39 = vmax.f32 %v479_v34, %v512_v13  ;;  %v513_v0 = vmul.f32 0.01, %v483_v36  ;;  %v485_v40 = vadd.f32 %v484_v37, %v2073_v50  ;;  %544 = vadd.xlane.f32.xlu0 %v543_v57  ;;  %v756_v34 = vld [vmem:[%s2844_s5 + $0xa8] sm:$0xff]  ;;  %v754_v13 = vld [vmem:[%s2844_s5 + $0x98] sm:$0xff]  ;;  %v751_v37 = vld [vmem:[%s2844_s5 + $0x80] sm:$0xff] }
 0x2f0   :  { %v488_v63 = vpop.f32.mrf.mxu1  ;;  %v752_v57 = vld [vmem:[%s2844_s5 + $0x88] sm:$0xff] }
 0x2f1   :  { %v514_v41 = vmul.f32 0.01, %v485_v40  ;;  %v489_v42 = vadd.f32 %v488_v63, %v2070_v54  ;;  %v546_v43 = vadd.f32 %v2104_v39, %v2102_v38  ;;  %v2110_v44 = vmax.f32 %v483_v36, %v513_v0  ;;  %v753_v36 = vld [vmem:[%s2844_s5 + $0x90] sm:$0xff]  ;;  %v750_v0 = vld [vmem:[%s2844_s5 + $0x78] sm:$0xff]  ;;  %v748_v63 = vld [vmem:[%s2844_s5 + $0x68] sm:$0xff] }
 0x2f2   :  { %v490_v7 = vpop.f32.mrf.mxu1 }
 0x2f3   :  { %v2112_v45 = vmax.f32 %v485_v40, %v514_v41  ;;  %v515_v46 = vmul.f32 0.01, %v489_v42  ;;  %v491_v8 = vadd.f32 %v490_v7, %v2073_v50  ;;  %547 = vadd.xlane.f32.xlu1 %v546_v43  ;;  %v749_v40 = vld [vmem:[%s2844_s5 + $0x70] sm:$0xff]  ;;  %v747_v41 = vld [vmem:[%s2844_s5 + $0x60] sm:$0xff]  ;;  %v744_v7 = vld [vmem:[%s2844_s5 + $0x48] sm:$0xff] }
 0x2f4   :  { %v494_v47 = vpop.f32.mrf.mxu1  ;;  %v745_v43 = vld [vmem:[%s2844_s5 + $0x50] sm:$0xff] }
 0x2f5   :  { %v516_v48 = vmul.f32 0.01, %v491_v8  ;;  %v495_v18 = vadd.f32 %v494_v47, %v2070_v54  ;;  %v549_v49 = vadd.f32 %v2112_v45, %v2110_v44  ;;  %v2118_v27 = vmax.f32 %v489_v42, %v515_v46  ;;  %v746_v42 = vld [vmem:[%s2844_s5 + $0x58] sm:$0xff]  ;;  %v743_v46 = vld [vmem:[%s2844_s5 + $0x40] sm:$0xff]  ;;  %v741_v47 = vld [vmem:[%s2844_s5 + $0x30] sm:$0xff] }
 0x2f6   :  { %v496_v51 = vpop.f32.mrf.mxu1 }
 0x2f7   :  { %v2120_v53 = vmax.f32 %v491_v8, %v516_v48  ;;  %v517_v55 = vmul.f32 0.01, %v495_v18  ;;  %v497_v56 = vadd.f32 %v496_v51, %v2073_v50  ;;  %550 = vadd.xlane.f32.xlu0 %v549_v49  ;;  %v742_v8 = vld [vmem:[%s2844_s5 + $0x38] sm:$0xff]  ;;  %v740_v48 = vld [vmem:[%s2844_s5 + $0x28] sm:$0xff]  ;;  %v737_v51 = vld [vmem:[%s2844_s5 + $0x10] sm:$0xff] }
 0x2f8   :  { %v500_v58 = vpop.f32.mrf.mxu1  ;;  %v738_v49 = vld [vmem:[%s2844_s5 + $0x18] sm:$0xff] }
 0x2f9   :  { %v518_v59 = vmul.f32 0.01, %v497_v56  ;;  %v501_v60 = vadd.f32 %v500_v58, %v2070_v54  ;;  %v552_v61 = vadd.f32 %v2120_v53, %v2118_v27  ;;  %v2126_v1 = vmax.f32 %v495_v18, %v517_v55  ;;  %v739_v18 = vld [vmem:[%s2844_s5 + $0x20] sm:$0xff]  ;;  %v736_v55 = vld [vmem:[%s2844_s5 + $0x8] sm:$0xff]  ;;  %v798_v58 = vld [vmem:[%s2844_s5 + $0x1f8] sm:$0xff] }
 0x2fa   :  { %v502_v62 = vpop.f32.mrf.mxu1 }
 0x2fb   :  { %v2128_v2 = vmax.f32 %v497_v56, %v518_v59  ;;  %v519_v5 = vmul.f32 0.01, %v501_v60  ;;  %v503_v6 = vadd.f32 %v502_v62, %v2073_v50  ;;  %553 = vadd.xlane.f32.xlu1 %v552_v61  ;;  %v765_v50 = vld [vmem:[%s2844_s5 + $0xf0] sm:$0xff]  ;;  %v735_v56 = vld [vmem:[%s2844_s5] sm:$0xff]  ;;  %v794_v62 = vld [vmem:[%s2844_s5 + $0x1d8] sm:$0xff] }
 0x2fc   :  { %819 = vmatpush1.msra.mxu0 %v765_v50  ;;  %v797_v59 = vld [vmem:[%s2844_s5 + $0x1f0] sm:$0xff]  ;;  %v795_v61 = vld [vmem:[%s2844_s5 + $0x1e0] sm:$0xff] }
 0x2fd   :  { %v520_v10 = vmul.f32 0.01, %v503_v6  ;;  %v555_v15 = vadd.f32 %v2128_v2, %v2126_v1  ;;  %v2133_v16 = vmax.f32 %v501_v60, %v519_v5  ;;  %820 = vmatprep.subr.mxu0 %v764_v23  ;;  %v796_v60 = vld [vmem:[%s2844_s5 + $0x1e8] sm:$0xff]  ;;  %v793_v5 = vld [vmem:[%s2844_s5 + $0x1d0] sm:$0xff] }
 0x2fe   :  { %821 = vmatpush1.msra.mxu0 %v763_v24 }
 0x2ff   :  { %v2135_v17 = vmax.f32 %v503_v6, %v520_v10  ;;  %556 = vadd.xlane.f32.xlu0 %v555_v15  ;;  %822 = vmatprep.subr.mxu0 %v762_v25  ;;  %v792_v6 = vld [vmem:[%s2844_s5 + $0x1c8] sm:$0xff] }
 0x300   :  { %823 = vmatpush1.msra.mxu0 %v761_v26 }
 0x301   :  { %v558_v54 = vadd.f32 %v2135_v17, %v2133_v16  ;;  %824 = vmatprep.subr.mxu0 %v760_v28 }
 0x302   :  { %825 = vmatpush1.msra.mxu0 %v759_v29 }
 0x303   :  { %559 = vadd.xlane.f32.xlu1 %v558_v54  ;;  %826 = vmatprep.subr.mxu0 %v758_v30 }
 0x304   :  { %827 = vmatpush1.msra.mxu0 %v757_v33 }
 0x305   :  { %828 = vmatprep.subr.mxu0 %v756_v34 }
 0x306   :  { %829 = vmatpush1.msra.mxu0 %v755_v35 }
 0x307   :  { %830 = vmatprep.subr.mxu0 %v754_v13 }
 0x308   :  { %831 = vmatpush1.msra.mxu0 %v753_v36 }
 0x309   :  { %832 = vmatprep.subr.mxu0 %v752_v57 }
 0x30a   :  { %833 = vmatpush1.msra.mxu0 %v751_v37 }
 0x30b   :  { %834 = vmatprep.subr.mxu0 %v750_v0 }
 0x30c   :  { %835 = vmatpush1.msra.mxu0 %v749_v40 }
 0x30d   :  { %836 = vmatprep.subr.mxu0 %v748_v63 }
 0x30e   :  { %837 = vmatpush1.msra.mxu0 %v747_v41 }
 0x30f   :  { %838 = vmatprep.subr.mxu0 %v746_v42 }
 0x310   :  { %839 = vmatpush1.msra.mxu0 %v745_v43 }
 0x311   :  { %840 = vmatprep.subr.mxu0 %v744_v7 }
 0x312   :  { %841 = vmatpush1.msra.mxu0 %v743_v46  ;;  %v790_v46 = vld [vmem:[%s2844_s5 + $0x1b8] sm:$0xff] }
 0x313   :  { %842 = vmatprep.subr.mxu0 %v742_v8 }
 0x314   :  { %843 = vmatpush1.msra.mxu0 %v741_v47  ;;  %v789_v47 = vld [vmem:[%s2844_s5 + $0x1b0] sm:$0xff] }
 0x315   :  { %844 = vmatprep.subr.mxu0 %v740_v48  ;;  %v788_v48 = vld [vmem:[%s2844_s5 + $0x1a8] sm:$0xff] }
 0x316   :  { %845 = vmatpush1.msra.mxu0 %v739_v18 }
 0x317   :  { %846 = vmatprep.subr.mxu0 %v738_v49 }
 0x318   :  { %847 = vmatpush1.msra.mxu0 %v737_v51 }
 0x319   :  { %848 = vmatprep.subr.mxu0 %v736_v55  ;;  %v787_v55 = vld [vmem:[%s2844_s5 + $0x1a0] sm:$0xff] }
 0x31a   :  { %849 = vmatpush1.msra.mxu0 %v735_v56 }
 0x31b   :  { %850 = vmatprep.subr.mxu0 %v798_v58  ;;  %v786_v58 = vld [vmem:[%s2844_s5 + $0x198] sm:$0xff] }
 0x31c   :  { %851 = vmatpush2.msra.mxu0 %v797_v59 }
 0x31d   :  { %852 = vmatprep.subr.mxu0 %v796_v60  ;;  %v785_v60 = vld [vmem:[%s2844_s5 + $0x190] sm:$0xff] }
 0x31e   :  { %853 = vmatpush2.msra.mxu0 %v795_v61  ;;  %v784_v61 = vld [vmem:[%s2844_s5 + $0x188] sm:$0xff] }
 0x31f   :  { %854 = vmatprep.subr.mxu0 %v794_v62 }
 0x320   :  { %855 = vmatpush2.msra.mxu0 %v793_v5 }
 0x321   :  { %856 = vmatprep.subr.mxu0 %v792_v6 }
 0x370   :  { %v539_v10 = vpop.xlane.xlu0 %538 }
 0x371   :  { %v562_v15 = vmul.f32 0.00390625, %v539_v10  ;;  %v783_v10 = vld [vmem:[%s2844_s5 + $0x180] sm:$0xff] }
 0x373   :  { %v2257_v54 = vsub.f32 %v2078_v3, %v562_v15  ;;  %v2260_v20 = vsub.f32 %v2080_v4, %v562_v15 }
 0x374   :  { %v542_v50 = vpop.xlane.xlu1 %541 }
 0x375   :  { %v563_v23 = vmul.f32 0.00390625, %v542_v50  ;;  %v586_v24 = vmul.f32 %v2257_v54, %v2257_v54  ;;  %v587_v25 = vmul.f32 %v2260_v20, %v2260_v20  ;;  %v782_v50 = vld [vmem:[%s2844_s5 + $0x178] sm:$0xff] }
 0x377   :  { %v2267_v26 = vsub.f32 %v2086_v21, %v563_v23  ;;  %v2270_v28 = vsub.f32 %v2088_v22, %v563_v23  ;;  %v602_v29 = vadd.f32 %v587_v25, %v586_v24  ;;  %v781_v24 = vld [vmem:[%s2844_s5 + $0x170] sm:$0xff]  ;;  %v780_v25 = vld [vmem:[%s2844_s5 + $0x168] sm:$0xff] }
 0x378   :  { %v545_v3 = vpop.xlane.xlu0 %544 }
 0x379   :  { %v564_v30 = vmul.f32 0.00390625, %v545_v3  ;;  %603 = vadd.xlane.f32.xlu0 %v602_v29  ;;  %v588_v4 = vmul.f32 %v2267_v26, %v2267_v26  ;;  %v589_v33 = vmul.f32 %v2270_v28, %v2270_v28 }
 0x37b   :  { %v2277_v34 = vsub.f32 %v2094_v31, %v564_v30  ;;  %v2280_v35 = vsub.f32 %v2096_v32, %v564_v30  ;;  %v605_v21 = vadd.f32 %v589_v33, %v588_v4  ;;  %v779_v4 = vld [vmem:[%s2844_s5 + $0x160] sm:$0xff]  ;;  %v778_v33 = vld [vmem:[%s2844_s5 + $0x158] sm:$0xff] }
 0x37c   :  { %v548_v13 = vpop.xlane.xlu1 %547 }
 0x37d   :  { %v565_v22 = vmul.f32 0.00390625, %v548_v13  ;;  %606 = vadd.xlane.f32.xlu1 %v605_v21  ;;  %v590_v36 = vmul.f32 %v2277_v34, %v2277_v34  ;;  %v591_v57 = vmul.f32 %v2280_v35, %v2280_v35  ;;  %v776_v13 = vld [vmem:[%s2844_s5 + $0x148] sm:$0xff] }
 0x37f   :  { %v2287_v37 = vsub.f32 %v2102_v38, %v565_v22  ;;  %v2290_v0 = vsub.f32 %v2104_v39, %v565_v22  ;;  %v608_v31 = vadd.f32 %v591_v57, %v590_v36  ;;  %v791_v39 = vld [vmem:[%s2844_s5 + $0x1c0] sm:$0xff]  ;;  %v774_v57 = vld [vmem:[%s2844_s5 + $0x138] sm:$0xff] }
 0x380   :  { %v551_v40 = vpop.xlane.xlu0 %550  ;;  %857 = vmatpush2.msra.mxu0 %v791_v39  ;;  %v775_v36 = vld [vmem:[%s2844_s5 + $0x140] sm:$0xff] }
 0x381   :  { %v566_v32 = vmul.f32 0.00390625, %v551_v40  ;;  %609 = vadd.xlane.f32.xlu0 %v608_v31  ;;  %v592_v63 = vmul.f32 %v2287_v37, %v2287_v37  ;;  %v593_v41 = vmul.f32 %v2290_v0, %v2290_v0  ;;  %858 = vmatprep.subr.mxu0 %v790_v46  ;;  %v773_v31 = vld [vmem:[%s2844_s5 + $0x130] sm:$0xff]  ;;  %v772_v40 = vld [vmem:[%s2844_s5 + $0x128] sm:$0xff]  ;;  %v767_v39 = vld [vmem:[%s2844_s5 + $0x100] sm:$0xff] }
 0x382   :  { %859 = vmatpush2.msra.mxu0 %v789_v47 }
 0x383   :  { %v2297_v42 = vsub.f32 %v2110_v44, %v566_v32  ;;  %v2300_v43 = vsub.f32 %v2112_v45, %v566_v32  ;;  %v611_v38 = vadd.f32 %v593_v41, %v592_v63  ;;  %860 = vmatprep.subr.mxu0 %v788_v48  ;;  %v771_v32 = vld [vmem:[%s2844_s5 + $0x120] sm:$0xff]  ;;  %v770_v63 = vld [vmem:[%s2844_s5 + $0x118] sm:$0xff]  ;;  %v769_v41 = vld [vmem:[%s2844_s5 + $0x110] sm:$0xff] }
 0x384   :  { %v554_v7 = vpop.xlane.xlu1 %553  ;;  %861 = vmatpush2.msra.mxu0 %v787_v55  ;;  %v672_v55 = vsub.s32 5, %v1988_v11 }
 0x385   :  { %v567_v8 = vmul.f32 0.00390625, %v554_v7  ;;  %612 = vadd.xlane.f32.xlu1 %v611_v38  ;;  %v594_v44 = vmul.f32 %v2297_v42, %v2297_v42  ;;  %v595_v45 = vmul.f32 %v2300_v43, %v2300_v43  ;;  %862 = vmatprep.subr.mxu0 %v786_v58  ;;  %v768_v38 = vld [vmem:[%s2844_s5 + $0x108] sm:$0xff] }
 0x386   :  { %863 = vmatpush2.msra.mxu0 %v785_v60  ;;  %v669_v60 = vrot.slane %v2061_v19, %v2034_v9 }
 0x387   :  { %v2319_v18 = vsub.f32 %v2118_v27, %v567_v8  ;;  %v2322_v49 = vsub.f32 %v2120_v53, %v567_v8  ;;  %v614_v51 = vadd.f32 %v595_v45, %v594_v44  ;;  %864 = vmatprep.subr.mxu0 %v784_v61 }
 0x388   :  { %v557_v56 = vpop.xlane.xlu0 %556  ;;  %865 = vmatpush2.msra.mxu0 %v783_v10  ;;  %v703_v10 = vrot.slane %v2061_v19, %v2037_v14 }
 0x389   :  { %v568_v59 = vmul.f32 0.00390625, %v557_v56  ;;  %615 = vadd.xlane.f32.xlu0 %v614_v51  ;;  %v596_v27 = vmul.f32 %v2319_v18, %v2319_v18  ;;  %v597_v53 = vmul.f32 %v2322_v49, %v2322_v49  ;;  %866 = vmatprep.subr.mxu0 %v782_v50  ;;  %v706_v56 = vsub.s32 6, %v1988_v11 }
 0x38a   :  { %867 = vmatpush2.msra.mxu0 %v781_v24 }
 0x38b   :  { %v2341_v62 = vsub.f32 %v2126_v1, %v568_v59  ;;  %v2344_v5 = vsub.f32 %v2128_v2, %v568_v59  ;;  %v617_v6 = vadd.f32 %v597_v53, %v596_v27  ;;  %868 = vmatprep.subr.mxu0 %v780_v25  ;;  %v673_v53 = vrot.slane %v2061_v19, %v672_v55 }
 0x38c   :  { %v560_v15 = vpop.xlane.xlu1 %559  ;;  %869 = vmatpush2.msra.mxu0 %v779_v4  ;;  %v707_v61 = vrot.slane %v2061_v19, %v706_v56  ;;  %v2435_v19 = vrot.slane %v703_v10, %v2037_v14 }
 0x38d   :  { %v569_v23 = vmul.f32 0.00390625, %v560_v15  ;;  %618 = vadd.xlane.f32.xlu1 %v617_v6  ;;  %v598_v1 = vmul.f32 %v2341_v62, %v2341_v62  ;;  %v599_v2 = vmul.f32 %v2344_v5, %v2344_v5  ;;  %870 = vmatprep.subr.mxu0 %v778_v33 }
 0x38e   :  { %v2430_v24 = vrot.slane %v707_v61, %v2037_v14 }
 0x38f   :  { %v2363_v29 = vsub.f32 %v2133_v16, %v569_v23  ;;  %v2366_v3 = vsub.f32 %v2135_v17, %v569_v23  ;;  %v620_v30 = vadd.f32 %v599_v2, %v598_v1  ;;  %v777_v17 = vld [vmem:[%s2844_s5 + $0x150] sm:$0xff]  ;;  %v2424_v23 = vrot.slane %v673_v53, %v2034_v9 }
 0x390   :  { %871 = vmatpush2.msra.mxu0 %v777_v17  ;;  %v2427_v1 = vrot.slane %v669_v60, %v2034_v9 }
 0x391   :  { %621 = vadd.xlane.f32.xlu0 %v620_v30  ;;  %v600_v21 = vmul.f32 %v2363_v29, %v2363_v29  ;;  %v601_v16 = vmul.f32 %v2366_v3, %v2366_v3  ;;  %872 = vmatprep.subr.mxu0 %v776_v13 }
 0x392   :  { %873 = vmatpush2.msra.mxu0 %v775_v36 }
 0x393   :  { %v623_v22 = vadd.f32 %v601_v16, %v600_v21  ;;  %874 = vmatprep.subr.mxu0 %v774_v57 }
 0x394   :  { %875 = vmatpush2.msra.mxu0 %v773_v31 }
 0x395   :  { %624 = vadd.xlane.f32.xlu1 %v623_v22  ;;  %876 = vmatprep.subr.mxu0 %v772_v40 }
 0x396   :  { %877 = vmatpush2.msra.mxu0 %v771_v32 }
 0x397   :  { %878 = vmatprep.subr.mxu0 %v770_v63 }
 0x398   :  { %879 = vmatpush2.msra.mxu0 %v769_v41 }
 0x399   :  { %880 = vmatprep.subr.mxu0 %v768_v38 }
 0x39a   :  { %881 = vmatpush2.msra.mxu0 %v767_v39 }
 0x402   :  { %v604_v7 = vpop.xlane.xlu0 %603 }
 0x403   :  { %v626_v46 = vmul.f32 0.00390625, %v604_v7 }
 0x405   :  { %v634_v8 = vadd.f32 1e-05, %v626_v46 }
 0x406   :  { %v607_v44 = vpop.xlane.xlu1 %606 }
 0x407   :  { %1785 = vrsqrt.f32 %v634_v8  ;;  %v627_v45 = vmul.f32 0.00390625, %v607_v44 }
 0x409   :  { %v635_v47 = vadd.f32 1e-05, %v627_v45 }
 0x40a   :  { %v610_v48 = vpop.xlane.xlu0 %609 }
 0x40b   :  { %1787 = vrsqrt.f32 %v635_v47  ;;  %v628_v51 = vmul.f32 0.00390625, %v610_v48 }
 0x40d   :  { %v636_v58 = vadd.f32 1e-05, %v628_v51 }
 0x40e   :  { %v613_v59 = vpop.xlane.xlu1 %612 }
 0x40f   :  { %1789 = vrsqrt.f32 %v636_v58  ;;  %v629_v27 = vmul.f32 0.00390625, %v613_v59 }
 0x411   :  { %v637_v6 = vadd.f32 1e-05, %v629_v27 }
 0x412   :  { %v616_v15 = vpop.xlane.xlu0 %615 }
 0x413   :  { %1791 = vrsqrt.f32 %v637_v6  ;;  %v630_v50 = vmul.f32 0.00390625, %v616_v15 }
 0x414   :  { %v1786_v2 = vpop.eup %1785 }
 0x415   :  { %v650_v25 = vmul.f32 %v1786_v2, %v2257_v54  ;;  %v638_v30 = vadd.f32 1e-05, %v630_v50  ;;  %v651_v4 = vmul.f32 %v1786_v2, %v2260_v20 }
 0x416   :  { %v619_v33 = vpop.xlane.xlu1 %618 }
 0x417   :  { %1793 = vrsqrt.f32 %v638_v30  ;;  %v631_v21 = vmul.f32 0.00390625, %v619_v33  ;;  %v685_v16 = vmul.f32 %v2424_v23, %v651_v4  ;;  %v684_v17 = vmul.f32 %v2427_v1, %v650_v25 }
 0x418   :  { %v1788_v13 = vpop.eup %1787 }
 0x419   :  { %v639_v22 = vadd.f32 1e-05, %v631_v21  ;;  %v719_v36 = vadd.f32 %v2430_v24, %v685_v16  ;;  %v718_v57 = vadd.f32 %v2435_v19, %v684_v17  ;;  %v653_v54 = vmul.f32 %v1788_v13, %v2270_v28 }
 0x41a   :  { %v622_v31 = vpop.xlane.xlu0 %621  ;;  %v652_v20 = vmul.f32 %v1788_v13, %v2267_v26 }
 0x41b   :  { %1795 = vrsqrt.f32 %v639_v22  ;;  %v632_v40 = vmul.f32 0.00390625, %v622_v31  ;;  %882 = vmatprep.mubr.f32.mxu0 %v719_v36  ;;  %v687_v32 = vmul.f32 %v2424_v23, %v653_v54 }
 0x41c   :  { %v1790_v63 = vpop.eup %1789  ;;  %883 = vmatmul.mubr.f32.vlgmr.msra.gmra.mxu0 %v718_v57  ;;  %v686_v41 = vmul.f32 %v2427_v1, %v652_v20 }
 0x41d   :  { %v640_v38 = vadd.f32 1e-05, %v632_v40  ;;  %v721_v39 = vadd.f32 %v2430_v24, %v687_v32  ;;  %v655_v7 = vmul.f32 %v1790_v63, %v2280_v35  ;;  %v654_v46 = vmul.f32 %v1790_v63, %v2277_v34  ;;  %v2486_v40 = vld [vmem:[%s2845_s6] sm:$0x77] }
 0x41e   :  { %v625_v28 = vpop.xlane.xlu1 %624  ;;  %v720_v8 = vadd.f32 %v2435_v19, %v686_v41 }
 0x41f   :  { %1797 = vrsqrt.f32 %v640_v38  ;;  %v633_v26 = vmul.f32 0.00390625, %v625_v28  ;;  %888 = vmatprep.mubr.f32.mxu0 %v721_v39  ;;  %v689_v44 = vmul.f32 %v2424_v23, %v655_v7  ;;  %v688_v45 = vmul.f32 %v2427_v1, %v654_v46 }
 0x420   :  { %v1792_v47 = vpop.eup %1791  ;;  %889 = vmatmul.mubr.f32.gmra.mxu0 %v720_v8 }
 0x421   :  { %v641_v48 = vadd.f32 1e-05, %v633_v26  ;;  %v723_v51 = vadd.f32 %v2430_v24, %v689_v44  ;;  %v722_v58 = vadd.f32 %v2435_v19, %v688_v45  ;;  %v657_v35 = vmul.f32 %v1792_v47, %v2290_v0 }
 0x422   :  { %v656_v34 = vmul.f32 %v1792_v47, %v2287_v37 }
 0x423   :  { %1799 = vrsqrt.f32 %v641_v48  ;;  %894 = vmatprep.mubr.f32.mxu0 %v723_v51  ;;  %v691_v59 = vmul.f32 %v2424_v23, %v657_v35 }
 0x424   :  { %v1794_v27 = vpop.eup %1793  ;;  %895 = vmatmul.mubr.f32.gmra.mxu0 %v722_v58  ;;  %v690_v53 = vmul.f32 %v2427_v1, %v656_v34 }
 0x425   :  { %v725_v60 = vadd.f32 %v2430_v24, %v691_v59  ;;  %v659_v61 = vmul.f32 %v1794_v27, %v2300_v43  ;;  %v658_v6 = vmul.f32 %v1794_v27, %v2297_v42 }
 0x426   :  { %v724_v10 = vadd.f32 %v2435_v19, %v690_v53 }
 0x427   :  { %900 = vmatprep.mubr.f32.mxu0 %v725_v60  ;;  %v693_v0 = vmul.f32 %v2424_v23, %v659_v61  ;;  %v692_v37 = vmul.f32 %v2427_v1, %v658_v6 }
 0x428   :  { %v1796_v15 = vpop.eup %1795  ;;  %901 = vmatmul.mubr.f32.gmra.mxu0 %v724_v10 }
 0x429   :  { %v727_v50 = vadd.f32 %v2430_v24, %v693_v0  ;;  %v726_v2 = vadd.f32 %v2435_v19, %v692_v37  ;;  %v661_v25 = vmul.f32 %v1796_v15, %v2322_v49  ;;  %v660_v30 = vmul.f32 %v1796_v15, %v2319_v18 }
 0x42b   :  { %906 = vmatprep.mubr.f32.mxu0 %v727_v50  ;;  %v695_v42 = vmul.f32 %v2424_v23, %v661_v25  ;;  %v694_v43 = vmul.f32 %v2427_v1, %v660_v30 }
 0x42c   :  { %v1798_v4 = vpop.eup %1797  ;;  %907 = vmatmul.mubr.f32.gmra.mxu0 %v726_v2 }
 0x42d   :  { %v729_v33 = vadd.f32 %v2430_v24, %v695_v42  ;;  %v728_v21 = vadd.f32 %v2435_v19, %v694_v43  ;;  %v663_v16 = vmul.f32 %v1798_v4, %v2344_v5  ;;  %v662_v17 = vmul.f32 %v1798_v4, %v2341_v62 }
 0x42f   :  { %912 = vmatprep.mubr.f32.mxu0 %v729_v33  ;;  %v697_v49 = vmul.f32 %v2424_v23, %v663_v16  ;;  %v696_v18 = vmul.f32 %v2427_v1, %v662_v17 }
 0x430   :  { %v1800_v13 = vpop.eup %1799  ;;  %913 = vmatmul.mubr.f32.gmra.mxu0 %v728_v21 }
 0x431   :  { %v731_v22 = vadd.f32 %v2430_v24, %v697_v49  ;;  %v730_v36 = vadd.f32 %v2435_v19, %v696_v18  ;;  %v665_v57 = vmul.f32 %v1800_v13, %v2366_v3  ;;  %v664_v54 = vmul.f32 %v1800_v13, %v2363_v29 }
 0x432   :  { %v803_v29 = vrot.slane %v2486_v40, %v1991_v12  ;;  %v807_v3 = vrot.slane %v2486_v40, %v380_v52 }
 0x433   :  { %918 = vmatprep.mubr.f32.mxu0 %v731_v22  ;;  %v699_v5 = vmul.f32 %v2424_v23, %v665_v57  ;;  %v698_v62 = vmul.f32 %v2427_v1, %v664_v54 }
 0x434   :  { %919 = vmatmul.mubr.f32.gmra.mxu0 %v730_v36  ;;  %v2494_v23 = vrot.slane %v803_v29, %v1991_v12  ;;  %v2497_v1 = vrot.slane %v807_v3, %v1991_v12 }
 0x435   :  { %v733_v31 = vadd.f32 %v2430_v24, %v699_v5  ;;  %v732_v20 = vadd.f32 %v2435_v19, %v698_v62 }
 0x437   :  { %924 = vmatprep.mubr.f32.mxu0 %v733_v31 }
 0x438   :  { %925 = vmatmul.mubr.f32.gmra.mxu0 %v732_v20 }
 0x4dc   :  { %v884_v24 = vpop.f32.mrf.mxu0 }
 0x4dd   :  { %v885_v19 = vadd.f32 %v884_v24, %v2494_v23 }
 0x4de   :  { %v886_v32 = vpop.f32.mrf.mxu0 }
 0x4df   :  { %v931_v63 = vmul.f32 0.01, %v885_v19  ;;  %v887_v41 = vadd.f32 %v886_v32, %v2497_v1 }
 0x4e0   :  { %v890_v38 = vpop.f32.mrf.mxu0 }
 0x4e1   :  { %v932_v39 = vmul.f32 0.01, %v887_v41  ;;  %v891_v7 = vadd.f32 %v890_v38, %v2494_v23  ;;  %v2502_v28 = vmax.f32 %v885_v19, %v931_v63 }
 0x4e2   :  { %v892_v46 = vpop.f32.mrf.mxu0 }
 0x4e3   :  { %v2504_v52 = vmax.f32 %v887_v41, %v932_v39  ;;  %v933_v8 = vmul.f32 0.01, %v891_v7  ;;  %v893_v26 = vadd.f32 %v892_v46, %v2497_v1 }
 0x4e4   :  { %v896_v44 = vpop.f32.mrf.mxu0 }
 0x4e5   :  { %v934_v45 = vmul.f32 0.01, %v893_v26  ;;  %v897_v47 = vadd.f32 %v896_v44, %v2494_v23  ;;  %v963_v48 = vadd.f32 %v2504_v52, %v2502_v28  ;;  %v2510_v58 = vmax.f32 %v891_v7, %v933_v8 }
 0x4e6   :  { %v898_v51 = vpop.f32.mrf.mxu0 }
 0x4e7   :  { %v2512_v35 = vmax.f32 %v893_v26, %v934_v45  ;;  %v935_v34 = vmul.f32 0.01, %v897_v47  ;;  %v899_v59 = vadd.f32 %v898_v51, %v2497_v1  ;;  %964 = vadd.xlane.f32.xlu0 %v963_v48 }
 0x4e8   :  { %v902_v27 = vpop.f32.mrf.mxu0 }
 0x4e9   :  { %v936_v53 = vmul.f32 0.01, %v899_v59  ;;  %v903_v60 = vadd.f32 %v902_v27, %v2494_v23  ;;  %v966_v61 = vadd.f32 %v2512_v35, %v2510_v58  ;;  %v2518_v10 = vmax.f32 %v897_v47, %v935_v34  ;;  %v1191_v34 = vld [vmem:[#allocation4 + $0xf8] sm:$0xff]  ;;  %v1190_v27 = vld [vmem:[#allocation4 + $0xf0] sm:$0xff] }
 0x4ea   :  { %v904_v6 = vpop.f32.mrf.mxu0  ;;  %1590 = vmatprep.subr.mxu1 %v1191_v34 }
 0x4eb   :  { %v2520_v0 = vmax.f32 %v899_v59, %v936_v53  ;;  %v937_v37 = vmul.f32 0.01, %v903_v60  ;;  %v905_v15 = vadd.f32 %v904_v6, %v2497_v1  ;;  %967 = vadd.xlane.f32.xlu1 %v966_v61  ;;  %v1175_v59 = vld [vmem:[#allocation4 + $0x78] sm:$0xff]  ;;  %v1174_v53 = vld [vmem:[#allocation4 + $0x70] sm:$0xff]  ;;  %v1188_v61 = vld [vmem:[#allocation4 + $0xe0] sm:$0xff] }
 0x4ec   :  { %v908_v50 = vpop.f32.mrf.mxu0  ;;  %1591 = vmatpush3.msra.mxu1 %v1175_v59  ;;  %v1172_v6 = vld [vmem:[#allocation4 + $0x60] sm:$0xff]  ;;  %v1185_v59 = vld [vmem:[#allocation4 + $0xc8] sm:$0xff] }
 0x4ed   :  { %v938_v2 = vmul.f32 0.01, %v905_v15  ;;  %v909_v25 = vadd.f32 %v908_v50, %v2494_v23  ;;  %v969_v30 = vadd.f32 %v2520_v0, %v2518_v10  ;;  %v2526_v43 = vmax.f32 %v903_v60, %v937_v37  ;;  %1592 = vmatprep.subr.mxu1 %v1190_v27  ;;  %v1173_v60 = vld [vmem:[#allocation4 + $0x68] sm:$0xff] }
 0x4ee   :  { %v910_v42 = vpop.f32.mrf.mxu0  ;;  %1593 = vmatpush3.msra.mxu1 %v1174_v53 }
 0x4ef   :  { %v2528_v4 = vmax.f32 %v905_v15, %v938_v2  ;;  %v939_v33 = vmul.f32 0.01, %v909_v25  ;;  %v911_v21 = vadd.f32 %v910_v42, %v2497_v1  ;;  %970 = vadd.xlane.f32.xlu0 %v969_v30 }
 0x4f0   :  { %v914_v16 = vpop.f32.mrf.mxu0 }
 0x4f1   :  { %v940_v17 = vmul.f32 0.01, %v911_v21  ;;  %v915_v49 = vadd.f32 %v914_v16, %v2494_v23  ;;  %v972_v18 = vadd.f32 %v2528_v4, %v2526_v43  ;;  %v2534_v22 = vmax.f32 %v909_v25, %v939_v33 }
 0x4f2   :  { %v916_v13 = vpop.f32.mrf.mxu0 }
 0x4f3   :  { %v2536_v36 = vmax.f32 %v911_v21, %v940_v17  ;;  %v941_v57 = vmul.f32 0.01, %v915_v49  ;;  %v917_v54 = vadd.f32 %v916_v13, %v2497_v1  ;;  %973 = vadd.xlane.f32.xlu1 %v972_v18 }
 0x4f4   :  { %v920_v5 = vpop.f32.mrf.mxu0 }
 0x4f5   :  { %v942_v62 = vmul.f32 0.01, %v917_v54  ;;  %v921_v31 = vadd.f32 %v920_v5, %v2494_v23  ;;  %v975_v20 = vadd.f32 %v2536_v36, %v2534_v22  ;;  %v2542_v3 = vmax.f32 %v915_v49, %v941_v57 }
 0x4f6   :  { %v922_v29 = vpop.f32.mrf.mxu0 }
 0x4f7   :  { %v2544_v24 = vmax.f32 %v917_v54, %v942_v62  ;;  %v943_v19 = vmul.f32 0.01, %v921_v31  ;;  %v923_v32 = vadd.f32 %v922_v29, %v2497_v1  ;;  %976 = vadd.xlane.f32.xlu0 %v975_v20 }
 0x4f8   :  { %v926_v63 = vpop.f32.mrf.mxu0 }
 0x4f9   :  { %v944_v41 = vmul.f32 0.01, %v923_v32  ;;  %v927_v38 = vadd.f32 %v926_v63, %v2494_v23  ;;  %v978_v39 = vadd.f32 %v2544_v24, %v2542_v3  ;;  %v2550_v46 = vmax.f32 %v921_v31, %v943_v19 }
 0x4fa   :  { %v928_v7 = vpop.f32.mrf.mxu0 }
 0x4fb   :  { %v2552_v8 = vmax.f32 %v923_v32, %v944_v41  ;;  %v945_v26 = vmul.f32 0.01, %v927_v38  ;;  %v929_v44 = vadd.f32 %v928_v7, %v2497_v1  ;;  %979 = vadd.xlane.f32.xlu1 %v978_v39  ;;  %v1189_v1 = vld [vmem:[#allocation4 + $0xe8] sm:$0xff] }
 0x4fc   :  { %1594 = vmatprep.subr.mxu1 %v1189_v1 }
 0x4fd   :  { %v946_v45 = vmul.f32 0.01, %v929_v44  ;;  %v981_v47 = vadd.f32 %v2552_v8, %v2550_v46  ;;  %v2557_v48 = vmax.f32 %v927_v38, %v945_v26  ;;  %1595 = vmatpush3.msra.mxu1 %v1173_v60  ;;  %v1184_v60 = vld [vmem:[#allocation4 + $0xc0] sm:$0xff] }
 0x4fe   :  { %1596 = vmatprep.subr.mxu1 %v1188_v61 }
 0x4ff   :  { %v2559_v51 = vmax.f32 %v929_v44, %v946_v45  ;;  %982 = vadd.xlane.f32.xlu0 %v981_v47  ;;  %1597 = vmatpush3.msra.mxu1 %v1172_v6  ;;  %v1171_v44 = vld [vmem:[#allocation4 + $0x58] sm:$0xff]  ;;  %v1186_v45 = vld [vmem:[#allocation4 + $0xd0] sm:$0xff] }
 0x501   :  { %v984_v23 = vadd.f32 %v2559_v51, %v2557_v48 }
 0x503   :  { %985 = vadd.xlane.f32.xlu1 %v984_v23  ;;  %v1170_v23 = vld [vmem:[#allocation4 + $0x50] sm:$0xff] }
 0x570   :  { %v965_v37 = vpop.xlane.xlu0 %964 }
 0x571   :  { %v987_v15 = vmul.f32 0.00390625, %v965_v37  ;;  %v1168_v37 = vld [vmem:[#allocation4 + $0x40] sm:$0xff] }
 0x573   :  { %v2564_v50 = vsub.f32 %v2502_v28, %v987_v15  ;;  %v2567_v2 = vsub.f32 %v2504_v52, %v987_v15 }
 0x574   :  { %v968_v25 = vpop.xlane.xlu1 %967 }
 0x575   :  { %v988_v30 = vmul.f32 0.00390625, %v968_v25  ;;  %v1011_v42 = vmul.f32 %v2564_v50, %v2564_v50  ;;  %v1012_v33 = vmul.f32 %v2567_v2, %v2567_v2  ;;  %v1183_v25 = vld [vmem:[#allocation4 + $0xb8] sm:$0xff] }
 0x577   :  { %v2574_v21 = vsub.f32 %v2510_v58, %v988_v30  ;;  %v2577_v16 = vsub.f32 %v2512_v35, %v988_v30  ;;  %v1027_v17 = vadd.f32 %v1012_v33, %v1011_v42 }
 0x578   :  { %v971_v28 = vpop.xlane.xlu0 %970 }
 0x579   :  { %v989_v49 = vmul.f32 0.00390625, %v971_v28  ;;  %1028 = vadd.xlane.f32.xlu0 %v1027_v17  ;;  %v1013_v52 = vmul.f32 %v2574_v21, %v2574_v21  ;;  %v1014_v18 = vmul.f32 %v2577_v16, %v2577_v16  ;;  %v1182_v17 = vld [vmem:[#allocation4 + $0xb0] sm:$0xff] }
 0x57b   :  { %v2584_v13 = vsub.f32 %v2518_v10, %v989_v49  ;;  %v2587_v57 = vsub.f32 %v2520_v0, %v989_v49  ;;  %v1030_v58 = vadd.f32 %v1014_v18, %v1013_v52  ;;  %v1166_v52 = vld [vmem:[#allocation4 + $0x30] sm:$0xff]  ;;  %v1181_v18 = vld [vmem:[#allocation4 + $0xa8] sm:$0xff] }
 0x57c   :  { %v974_v54 = vpop.xlane.xlu1 %973 }
 0x57d   :  { %v990_v35 = vmul.f32 0.00390625, %v974_v54  ;;  %1031 = vadd.xlane.f32.xlu1 %v1030_v58  ;;  %v1015_v5 = vmul.f32 %v2584_v13, %v2584_v13  ;;  %v1016_v62 = vmul.f32 %v2587_v57, %v2587_v57 }
 0x57f   :  { %v2594_v31 = vsub.f32 %v2526_v43, %v990_v35  ;;  %v2597_v20 = vsub.f32 %v2528_v4, %v990_v35  ;;  %v1033_v10 = vadd.f32 %v1016_v62, %v1015_v5  ;;  %v1187_v4 = vld [vmem:[#allocation4 + $0xd8] sm:$0xff]  ;;  %v1165_v35 = vld [vmem:[#allocation4 + $0x28] sm:$0xff] }
 0x580   :  { %v977_v29 = vpop.xlane.xlu0 %976  ;;  %1598 = vmatprep.subr.mxu1 %v1187_v4  ;;  %v1179_v62 = vld [vmem:[#allocation4 + $0x98] sm:$0xff] }
 0x581   :  { %v991_v0 = vmul.f32 0.00390625, %v977_v29  ;;  %1034 = vadd.xlane.f32.xlu0 %v1033_v10  ;;  %v1017_v19 = vmul.f32 %v2594_v31, %v2594_v31  ;;  %v1018_v32 = vmul.f32 %v2597_v20, %v2597_v20  ;;  %1599 = vmatpush3.msra.mxu1 %v1171_v44  ;;  %v1163_v10 = vld [vmem:[#allocation4 + $0x18] sm:$0xff]  ;;  %v1178_v29 = vld [vmem:[#allocation4 + $0x90] sm:$0xff] }
 0x582   :  { %1600 = vmatprep.subr.mxu1 %v1186_v45 }
 0x583   :  { %v2604_v63 = vsub.f32 %v2534_v22, %v991_v0  ;;  %v2607_v41 = vsub.f32 %v2536_v36, %v991_v0  ;;  %v1036_v43 = vadd.f32 %v1018_v32, %v1017_v19  ;;  %1601 = vmatpush3.msra.mxu1 %v1170_v23  ;;  %v1162_v0 = vld [vmem:[#allocation4 + $0x10] sm:$0xff]  ;;  %v1177_v19 = vld [vmem:[#allocation4 + $0x88] sm:$0xff] }
 0x584   :  { %v980_v38 = vpop.xlane.xlu1 %979  ;;  %1602 = vmatprep.subr.mxu1 %v1185_v59  ;;  %v1161_v32 = vld [vmem:[#allocation4 + $0x8] sm:$0xff] }
 0x585   :  { %v992_v39 = vmul.f32 0.00390625, %v980_v38  ;;  %1037 = vadd.xlane.f32.xlu1 %v1036_v43  ;;  %v1019_v7 = vmul.f32 %v2604_v63, %v2604_v63  ;;  %v1020_v26 = vmul.f32 %v2607_v41, %v2607_v41  ;;  %v1176_v43 = vld [vmem:[#allocation4 + $0x80] sm:$0xff] }
 0x586   :  { %v1160_v38 = vld [vmem:[#allocation4] sm:$0xff] }
 0x587   :  { %v2614_v22 = vsub.f32 %v2542_v3, %v992_v39  ;;  %v2617_v36 = vsub.f32 %v2544_v24, %v992_v39  ;;  %v1039_v47 = vadd.f32 %v1020_v26, %v1019_v7  ;;  %v1169_v3 = vld [vmem:[#allocation4 + $0x48] sm:$0xff] }
 0x588   :  { %v983_v34 = vpop.xlane.xlu0 %982  ;;  %1603 = vmatpush3.msra.mxu1 %v1169_v3  ;;  %v1132_v3 = vrot.slane %v2486_v40, %v706_v56 }
 0x589   :  { %v993_v27 = vmul.f32 0.00390625, %v983_v34  ;;  %1040 = vadd.xlane.f32.xlu0 %v1039_v47  ;;  %v1021_v53 = vmul.f32 %v2614_v22, %v2614_v22  ;;  %v1022_v1 = vmul.f32 %v2617_v36, %v2617_v36  ;;  %1604 = vmatprep.subr.mxu1 %v1184_v60 }
 0x58a   :  { %1605 = vmatpush3.msra.mxu1 %v1168_v37 }
 0x58b   :  { %v2624_v24 = vsub.f32 %v2550_v46, %v993_v27  ;;  %v2627_v61 = vsub.f32 %v2552_v8, %v993_v27  ;;  %v1042_v6 = vadd.f32 %v1022_v1, %v1021_v53  ;;  %1606 = vmatprep.subr.mxu1 %v1183_v25  ;;  %v1167_v46 = vld [vmem:[#allocation4 + $0x38] sm:$0xff]  ;;  %v1098_v53 = vrot.slane %v2486_v40, %v672_v55 }
 0x58c   :  { %v986_v15 = vpop.xlane.xlu1 %985  ;;  %1607 = vmatpush3.msra.mxu1 %v1167_v46  ;;  %v1094_v1 = vrot.slane %v2486_v40, %v2034_v9 }
 0x58d   :  { %v994_v30 = vmul.f32 0.00390625, %v986_v15  ;;  %1043 = vadd.xlane.f32.xlu1 %v1042_v6  ;;  %v1023_v42 = vmul.f32 %v2624_v24, %v2624_v24  ;;  %v1024_v33 = vmul.f32 %v2627_v61, %v2627_v61  ;;  %1608 = vmatprep.subr.mxu1 %v1182_v17  ;;  %v1128_v6 = vrot.slane %v2486_v40, %v2037_v14 }
 0x58e   :  { %1609 = vmatpush3.msra.mxu1 %v1166_v52  ;;  %v2654_v25 = vrot.slane %v1098_v53, %v2034_v9 }
 0x58f   :  { %v2634_v8 = vsub.f32 %v2557_v48, %v994_v30  ;;  %v2637_v28 = vsub.f32 %v2559_v51, %v994_v30  ;;  %v1045_v49 = vadd.f32 %v1024_v33, %v1023_v42  ;;  %1610 = vmatprep.subr.mxu1 %v1181_v18  ;;  %v1180_v48 = vld [vmem:[#allocation4 + $0xa0] sm:$0xff]  ;;  %v2657_v30 = vrot.slane %v1094_v1, %v2034_v9 }
 0x590   :  { %1611 = vmatpush3.msra.mxu1 %v1165_v35  ;;  %v1164_v51 = vld [vmem:[#allocation4 + $0x20] sm:$0xff]  ;;  %v2660_v42 = vrot.slane %v1132_v3, %v2037_v14  ;;  %v2665_v40 = vrot.slane %v1128_v6, %v2037_v14 }
 0x591   :  { %1046 = vadd.xlane.f32.xlu0 %v1045_v49  ;;  %v1025_v58 = vmul.f32 %v2634_v8, %v2634_v8  ;;  %v1026_v54 = vmul.f32 %v2637_v28, %v2637_v28  ;;  %1612 = vmatprep.subr.mxu1 %v1180_v48 }
 0x592   :  { %1613 = vmatpush3.msra.mxu1 %v1164_v51 }
 0x593   :  { %v1048_v5 = vadd.f32 %v1026_v54, %v1025_v58  ;;  %1614 = vmatprep.subr.mxu1 %v1179_v62 }
 0x594   :  { %1615 = vmatpush3.msra.mxu1 %v1163_v10 }
 0x595   :  { %1049 = vadd.xlane.f32.xlu1 %v1048_v5  ;;  %1616 = vmatprep.subr.mxu1 %v1178_v29 }
 0x596   :  { %1617 = vmatpush3.msra.mxu1 %v1162_v0 }
 0x597   :  { %1618 = vmatprep.subr.mxu1 %v1177_v19 }
 0x598   :  { %1619 = vmatpush3.msra.mxu1 %v1161_v32 }
 0x599   :  { %1620 = vmatprep.subr.mxu1 %v1176_v43 }
 0x59a   :  { %1621 = vmatpush3.msra.mxu1 %v1160_v38 }
 0x602   :  { %v1029_v4 = vpop.xlane.xlu0 %1028 }
 0x603   :  { %v1051_v39 = vmul.f32 0.00390625, %v1029_v4 }
 0x605   :  { %v1059_v7 = vadd.f32 1e-05, %v1051_v39 }
 0x606   :  { %v1032_v26 = vpop.xlane.xlu1 %1031 }
 0x607   :  { %1801 = vrsqrt.f32 %v1059_v7  ;;  %v1052_v44 = vmul.f32 0.00390625, %v1032_v26 }
 0x609   :  { %v1060_v45 = vadd.f32 1e-05, %v1052_v44 }
 0x60a   :  { %v1035_v47 = vpop.xlane.xlu0 %1034 }
 0x60b   :  { %1803 = vrsqrt.f32 %v1060_v45  ;;  %v1053_v23 = vmul.f32 0.00390625, %v1035_v47 }
 0x60d   :  { %v1061_v34 = vadd.f32 1e-05, %v1053_v23 }
 0x60e   :  { %v1038_v59 = vpop.xlane.xlu1 %1037 }
 0x60f   :  { %1805 = vrsqrt.f32 %v1061_v34  ;;  %v1054_v27 = vmul.f32 0.00390625, %v1038_v59 }
 0x611   :  { %v1062_v60 = vadd.f32 1e-05, %v1054_v27 }
 0x612   :  { %v1041_v37 = vpop.xlane.xlu0 %1040 }
 0x613   :  { %1807 = vrsqrt.f32 %v1062_v60  ;;  %v1055_v15 = vmul.f32 0.00390625, %v1041_v37 }
 0x614   :  { %v1802_v55 = vpop.eup %1801 }
 0x615   :  { %v1075_v11 = vmul.f32 %v1802_v55, %v2564_v50  ;;  %v1063_v56 = vadd.f32 1e-05, %v1055_v15  ;;  %v1076_v33 = vmul.f32 %v1802_v55, %v2567_v2 }
 0x616   :  { %v1044_v46 = vpop.xlane.xlu1 %1043 }
 0x617   :  { %1809 = vrsqrt.f32 %v1063_v56  ;;  %v1056_v17 = vmul.f32 0.00390625, %v1044_v46  ;;  %v1110_v49 = vmul.f32 %v2654_v25, %v1076_v33  ;;  %v1109_v52 = vmul.f32 %v2657_v30, %v1075_v11 }
 0x618   :  { %v1804_v18 = vpop.eup %1803 }
 0x619   :  { %v1064_v58 = vadd.f32 1e-05, %v1056_v17  ;;  %v1144_v54 = vadd.f32 %v2660_v42, %v1110_v49  ;;  %v1143_v35 = vadd.f32 %v2665_v40, %v1109_v52  ;;  %v1078_v50 = vmul.f32 %v1804_v18, %v2577_v16 }
 0x61a   :  { %v1047_v48 = vpop.xlane.xlu0 %1046  ;;  %v1077_v2 = vmul.f32 %v1804_v18, %v2574_v21 }
 0x61b   :  { %1811 = vrsqrt.f32 %v1064_v58  ;;  %v1057_v5 = vmul.f32 0.00390625, %v1047_v48  ;;  %1260 = vmatprep.mubr.f32.mxu1 %v1144_v54  ;;  %v1112_v51 = vmul.f32 %v2654_v25, %v1078_v50 }
 0x61c   :  { %v1806_v62 = vpop.eup %1805  ;;  %1261 = vmatmul.mubr.f32.vlgmr.msra.gmra.mxu1 %v1143_v35  ;;  %v1111_v10 = vmul.f32 %v2657_v30, %v1077_v2 }
 0x61d   :  { %v1065_v29 = vadd.f32 1e-05, %v1057_v5  ;;  %v1146_v0 = vadd.f32 %v2660_v42, %v1112_v51  ;;  %v1080_v19 = vmul.f32 %v1806_v62, %v2587_v57  ;;  %v1079_v32 = vmul.f32 %v1806_v62, %v2584_v13 }
 0x61e   :  { %v1050_v16 = vpop.xlane.xlu1 %1049  ;;  %v1145_v43 = vadd.f32 %v2665_v40, %v1111_v10 }
 0x61f   :  { %1813 = vrsqrt.f32 %v1065_v29  ;;  %v1058_v21 = vmul.f32 0.00390625, %v1050_v16  ;;  %1265 = vmatprep.mubr.f32.mxu1 %v1146_v0  ;;  %v1114_v38 = vmul.f32 %v2654_v25, %v1080_v19  ;;  %v1113_v4 = vmul.f32 %v2657_v30, %v1079_v32 }
 0x620   :  { %v1808_v39 = vpop.eup %1807  ;;  %1266 = vmatmul.mubr.f32.gmra.mxu1 %v1145_v43 }
 0x621   :  { %v1066_v7 = vadd.f32 1e-05, %v1058_v21  ;;  %v1148_v26 = vadd.f32 %v2660_v42, %v1114_v38  ;;  %v1147_v44 = vadd.f32 %v2665_v40, %v1113_v4  ;;  %v1082_v57 = vmul.f32 %v1808_v39, %v2597_v20 }
 0x622   :  { %v1081_v13 = vmul.f32 %v1808_v39, %v2594_v31 }
 0x623   :  { %1815 = vrsqrt.f32 %v1066_v7  ;;  %1270 = vmatprep.mubr.f32.mxu1 %v1148_v26  ;;  %v1116_v45 = vmul.f32 %v2654_v25, %v1082_v57 }
 0x624   :  { %v1810_v47 = vpop.eup %1809  ;;  %1271 = vmatmul.mubr.f32.gmra.mxu1 %v1147_v44  ;;  %v1115_v23 = vmul.f32 %v2657_v30, %v1081_v13 }
 0x625   :  { %v1150_v34 = vadd.f32 %v2660_v42, %v1116_v45  ;;  %v1084_v59 = vmul.f32 %v1810_v47, %v2607_v41  ;;  %v1083_v27 = vmul.f32 %v1810_v47, %v2604_v63 }
 0x626   :  { %v1149_v53 = vadd.f32 %v2665_v40, %v1115_v23 }
 0x627   :  { %1275 = vmatprep.mubr.f32.mxu1 %v1150_v34  ;;  %v1118_v20 = vmul.f32 %v2654_v25, %v1084_v59  ;;  %v1117_v31 = vmul.f32 %v2657_v30, %v1083_v27 }
 0x628   :  { %v1812_v1 = vpop.eup %1811  ;;  %1276 = vmatmul.mubr.f32.gmra.mxu1 %v1149_v53 }
 0x629   :  { %v1152_v3 = vadd.f32 %v2660_v42, %v1118_v20  ;;  %v1151_v60 = vadd.f32 %v2665_v40, %v1117_v31  ;;  %v1086_v6 = vmul.f32 %v1812_v1, %v2617_v36  ;;  %v1085_v37 = vmul.f32 %v1812_v1, %v2614_v22 }
 0x62b   :  { %1280 = vmatprep.mubr.f32.mxu1 %v1152_v3  ;;  %v1120_v63 = vmul.f32 %v2654_v25, %v1086_v6  ;;  %v1119_v41 = vmul.f32 %v2657_v30, %v1085_v37 }
 0x62c   :  { %v1814_v15 = vpop.eup %1813  ;;  %1281 = vmatmul.mubr.f32.gmra.mxu1 %v1151_v60 }
 0x62d   :  { %v1154_v55 = vadd.f32 %v2660_v42, %v1120_v63  ;;  %v1153_v11 = vadd.f32 %v2665_v40, %v1119_v41  ;;  %v1088_v56 = vmul.f32 %v1814_v15, %v2627_v61  ;;  %v1087_v33 = vmul.f32 %v1814_v15, %v2624_v24 }
 0x62f   :  { %1285 = vmatprep.mubr.f32.mxu1 %v1154_v55  ;;  %v1122_v36 = vmul.f32 %v2654_v25, %v1088_v56  ;;  %v1121_v22 = vmul.f32 %v2657_v30, %v1087_v33  ;;  %v1444_v33 = vld [vmem:[%s2848_s9 + $0x78] sm:$0xff] }
 0x630   :  { %v1816_v46 = vpop.eup %1815  ;;  %1286 = vmatmul.mubr.f32.gmra.mxu1 %v1153_v11  ;;  %1730 = vmatprep.subr.mxu1 %v1444_v33 }
 0x631   :  { %v1156_v17 = vadd.f32 %v2660_v42, %v1122_v36  ;;  %v1155_v49 = vadd.f32 %v2665_v40, %v1121_v22  ;;  %v1090_v52 = vmul.f32 %v1816_v46, %v2637_v28  ;;  %v1089_v18 = vmul.f32 %v1816_v46, %v2634_v8  ;;  %v2716_v8 = vld [vmem:[%s2847_s8] sm:$0x7]  ;;  %v1443_v36 = vld [vmem:[%s2848_s9 + $0x70] sm:$0xff]  ;;  %1686 = vmatprep.subr.mxu0 %v1444_v33 }
 0x632   :  { %1746 = vmatpush3.msra.mxu1 %v1444_v33  ;;  %1687 = vmatpush3.msra.mxu0 %v1444_v33 }
 0x633   :  { %1290 = vmatprep.mubr.f32.mxu1 %v1156_v17  ;;  %v1124_v61 = vmul.f32 %v2654_v25, %v1090_v52  ;;  %v1123_v24 = vmul.f32 %v2657_v30, %v1089_v18  ;;  %v1195_v30 = vrot.slane %v2716_v8, %v1991_v12  ;;  %1731 = vmatprep.subr.mxu1 %v1443_v36 }
 0x634   :  { %1291 = vmatmul.mubr.f32.gmra.mxu1 %v1155_v49  ;;  %1688 = vmatprep.subr.mxu0 %v1443_v36 }
 0x635   :  { %v1158_v58 = vadd.f32 %v2660_v42, %v1124_v61  ;;  %v1157_v54 = vadd.f32 %v2665_v40, %v1123_v24  ;;  %1747 = vmatpush3.msra.mxu1 %v1443_v36  ;;  %1689 = vmatpush3.msra.mxu0 %v1443_v36 }
 0x637   :  { %1295 = vmatprep.mubr.f32.mxu1 %v1158_v58 }
 0x638   :  { %1296 = vmatmul.mubr.f32.gmra.mxu1 %v1157_v54 }
 0x6dc   :  { %v1622_v35 = vpop.f32.mrf.mxu1 }
 0x6de   :  { %v1623_v50 = vpop.f32.mrf.mxu1 }
 0x6df   :  { %v1624_v0 = vadd.f32 %v1623_v50, %v1622_v35 }
 0x6e0   :  { %v1625_v48 = vpop.f32.mrf.mxu1 }
 0x6e1   :  { %v1263_v4 = vadd.f32 %v1624_v0, %v1195_v30  ;;  %v1442_v0 = vld [vmem:[%s2848_s9 + $0x68] sm:$0xff] }
 0x6e2   :  { %v1626_v2 = vpop.f32.mrf.mxu1  ;;  %1732 = vmatprep.subr.mxu1 %v1442_v0  ;;  %1690 = vmatprep.subr.mxu0 %v1442_v0 }
 0x6e3   :  { %v1627_v39 = vadd.f32 %v1626_v2, %v1625_v48  ;;  %v1301_v34 = vmul.f32 0.01, %v1263_v4  ;;  %1748 = vmatpush3.msra.mxu1 %v1442_v0  ;;  %1691 = vmatpush3.msra.mxu0 %v1442_v0 }
 0x6e4   :  { %v1628_v28 = vpop.f32.mrf.mxu1 }
 0x6e5   :  { %v1268_v45 = vadd.f32 %v1627_v39, %v1195_v30  ;;  %v1309_v3 = vmax.f32 %v1263_v4, %v1301_v34  ;;  %v1440_v39 = vld [vmem:[%s2848_s9 + $0x58] sm:$0xff] }
 0x6e6   :  { %v1629_v25 = vpop.f32.mrf.mxu1  ;;  %v1432_v34 = vld [vmem:[%s2848_s9 + $0x18] sm:$0xff] }
 0x6e7   :  { %v1630_v5 = vadd.f32 %v1629_v25, %v1628_v28  ;;  %v1302_v60 = vmul.f32 0.01, %v1268_v45 }
 0x6e8   :  { %v1631_v42 = vpop.f32.mrf.mxu1 }
 0x6e9   :  { %v1273_v51 = vadd.f32 %v1630_v5, %v1195_v30  ;;  %v1310_v15 = vmax.f32 %v1268_v45, %v1302_v60  ;;  %v1435_v45 = vld [vmem:[%s2848_s9 + $0x30] sm:$0xff] }
 0x6ea   :  { %v1632_v40 = vpop.f32.mrf.mxu1 }
 0x6eb   :  { %v1633_v62 = vadd.f32 %v1632_v40, %v1631_v42  ;;  %v1303_v10 = vmul.f32 0.01, %v1273_v51 }
 0x6ec   :  { %v1634_v29 = vpop.f32.mrf.mxu1 }
 0x6ed   :  { %v1278_v19 = vadd.f32 %v1633_v62, %v1195_v30  ;;  %v1311_v32 = vmax.f32 %v1273_v51, %v1303_v10 }
 0x6ee   :  { %v1635_v16 = vpop.f32.mrf.mxu1 }
 0x6ef   :  { %v1636_v43 = vadd.f32 %v1635_v16, %v1634_v29  ;;  %1321 = vadd.xlane.f32.xlu0 %v1311_v32  ;;  %v1304_v21 = vmul.f32 0.01, %v1278_v19  ;;  %v1441_v16 = vld [vmem:[%s2848_s9 + $0x60] sm:$0xff] }
 0x6f0   :  { %v1637_v38 = vpop.f32.mrf.mxu1  ;;  %1733 = vmatprep.subr.mxu1 %v1441_v16  ;;  %1692 = vmatprep.subr.mxu0 %v1441_v16 }
 0x6f1   :  { %v1283_v7 = vadd.f32 %v1636_v43, %v1195_v30  ;;  %v1312_v26 = vmax.f32 %v1278_v19, %v1304_v21  ;;  %1749 = vmatpush3.msra.mxu1 %v1441_v16  ;;  %1693 = vmatpush3.msra.mxu0 %v1441_v16 }
 0x6f2   :  { %v1638_v12 = vpop.f32.mrf.mxu1  ;;  %1734 = vmatprep.subr.mxu1 %v1440_v39  ;;  %1694 = vmatprep.subr.mxu0 %v1440_v39 }
 0x6f3   :  { %v1639_v44 = vadd.f32 %v1638_v12, %v1637_v38  ;;  %1323 = vadd.xlane.f32.xlu1 %v1312_v26  ;;  %v1305_v57 = vmul.f32 0.01, %v1283_v7  ;;  %1750 = vmatpush3.msra.mxu1 %v1440_v39 }
 0x6f4   :  { %v1640_v13 = vpop.f32.mrf.mxu1  ;;  %1695 = vmatpush3.msra.mxu0 %v1440_v39 }
 0x6f5   :  { %v1288_v47 = vadd.f32 %v1639_v44, %v1195_v30  ;;  %v1313_v23 = vmax.f32 %v1283_v7, %v1305_v57  ;;  %v1438_v44 = vld [vmem:[%s2848_s9 + $0x48] sm:$0xff]  ;;  %v1437_v57 = vld [vmem:[%s2848_s9 + $0x40] sm:$0xff] }
 0x6f6   :  { %v1641_v59 = vpop.f32.mrf.mxu1 }
 0x6f7   :  { %v1642_v27 = vadd.f32 %v1641_v59, %v1640_v13  ;;  %1325 = vadd.xlane.f32.xlu0 %v1313_v23  ;;  %v1306_v53 = vmul.f32 0.01, %v1288_v47  ;;  %v1436_v13 = vld [vmem:[%s2848_s9 + $0x38] sm:$0xff]  ;;  %v1431_v59 = vld [vmem:[%s2848_s9 + $0x10] sm:$0xff] }
 0x6f8   :  { %v1643_v20 = vpop.f32.mrf.mxu1 }
 0x6f9   :  { %v1293_v31 = vadd.f32 %v1642_v27, %v1195_v30  ;;  %v1314_v1 = vmax.f32 %v1288_v47, %v1306_v53  ;;  %v1434_v47 = vld [vmem:[%s2848_s9 + $0x28] sm:$0xff]  ;;  %v1429_v53 = vld [vmem:[%s2848_s9] sm:$0xff] }
 0x6fa   :  { %v1644_v6 = vpop.f32.mrf.mxu1  ;;  %v1430_v27 = vld [vmem:[%s2848_s9 + $0x8] sm:$0xff] }
 0x6fb   :  { %v1645_v37 = vadd.f32 %v1644_v6, %v1643_v20  ;;  %1327 = vadd.xlane.f32.xlu1 %v1314_v1  ;;  %1317 = vadd.xlane.f32.xlu0 %v1309_v3  ;;  %v1307_v63 = vmul.f32 0.01, %v1293_v31 }
 0x6fd   :  { %v1298_v41 = vadd.f32 %v1645_v37, %v1195_v30  ;;  %v1315_v55 = vmax.f32 %v1293_v31, %v1307_v63 }
 0x6ff   :  { %1319 = vadd.xlane.f32.xlu0 %v1310_v15  ;;  %1329 = vadd.xlane.f32.xlu1 %v1315_v55  ;;  %v1308_v11 = vmul.f32 0.01, %v1298_v41 }
 0x701   :  { %v1316_v56 = vmax.f32 %v1298_v41, %v1308_v11 }
 0x703   :  { %1331 = vadd.xlane.f32.xlu1 %v1316_v56 }
 0x778   :  { %v1322_v22 = vpop.xlane.xlu0 %1321 }
 0x779   :  { %v1335_v46 = vmul.f32 0.0078125, %v1322_v22 }
 0x77b   :  { %v2726_v17 = vsub.f32 %v1311_v32, %v1335_v46 }
 0x77c   :  { %v1324_v49 = vpop.xlane.xlu1 %1323 }
 0x77d   :  { %v1336_v52 = vmul.f32 0.0078125, %v1324_v49  ;;  %v1351_v18 = vmul.f32 %v2726_v17, %v2726_v17 }
 0x77f   :  { %v2730_v61 = vsub.f32 %v1312_v26, %v1336_v52  ;;  %1361 = vadd.xlane.f32.xlu0 %v1351_v18  ;;  %v1439_v26 = vld [vmem:[%s2848_s9 + $0x50] sm:$0xff]  ;;  %v1408_v18 = vrot.slane %v2716_v8, %v2034_v9 }
 0x780   :  { %v1326_v24 = vpop.xlane.xlu0 %1325  ;;  %1735 = vmatprep.subr.mxu1 %v1439_v26  ;;  %1696 = vmatprep.subr.mxu0 %v1439_v26 }
 0x781   :  { %v1337_v58 = vmul.f32 0.0078125, %v1326_v24  ;;  %v1352_v54 = vmul.f32 %v2730_v61, %v2730_v61  ;;  %1751 = vmatpush3.msra.mxu1 %v1439_v26  ;;  %1697 = vmatpush3.msra.mxu0 %v1439_v26 }
 0x782   :  { %1736 = vmatprep.subr.mxu1 %v1438_v44  ;;  %1698 = vmatprep.subr.mxu0 %v1438_v44 }
 0x783   :  { %v2734_v35 = vsub.f32 %v1313_v23, %v1337_v58  ;;  %1363 = vadd.xlane.f32.xlu1 %v1352_v54  ;;  %1752 = vmatpush3.msra.mxu1 %v1438_v44  ;;  %v1433_v23 = vld [vmem:[%s2848_s9 + $0x20] sm:$0xff] }
 0x784   :  { %v1328_v50 = vpop.xlane.xlu1 %1327  ;;  %v1318_v48 = vpop.xlane.xlu0 %1317  ;;  %1737 = vmatprep.subr.mxu1 %v1437_v57  ;;  %1699 = vmatpush3.msra.mxu0 %v1438_v44 }
 0x785   :  { %v1338_v2 = vmul.f32 0.0078125, %v1328_v50  ;;  %v1333_v28 = vmul.f32 0.0078125, %v1318_v48  ;;  %v1353_v25 = vmul.f32 %v2734_v35, %v2734_v35  ;;  %1753 = vmatpush3.msra.mxu1 %v1437_v57  ;;  %1700 = vmatprep.subr.mxu0 %v1437_v57  ;;  %v1420_v48 = vrot.slane %v2716_v8, %v2037_v14 }
 0x786   :  { %1738 = vmatprep.subr.mxu1 %v1436_v13  ;;  %1701 = vmatpush3.msra.mxu0 %v1437_v57 }
 0x787   :  { %v2738_v30 = vsub.f32 %v1314_v1, %v1338_v2  ;;  %v2740_v5 = vsub.f32 %v1309_v3, %v1333_v28  ;;  %1365 = vadd.xlane.f32.xlu0 %v1353_v25  ;;  %1754 = vmatpush3.msra.mxu1 %v1436_v13 }
 0x788   :  { %v1330_v42 = vpop.xlane.xlu1 %1329  ;;  %v1320_v51 = vpop.xlane.xlu0 %1319  ;;  %1702 = vmatprep.subr.mxu0 %v1436_v13  ;;  %1739 = vmatprep.subr.mxu1 %v1435_v45 }
 0x789   :  { %v1339_v40 = vmul.f32 0.0078125, %v1330_v42  ;;  %v1334_v62 = vmul.f32 0.0078125, %v1320_v51  ;;  %v1354_v10 = vmul.f32 %v2738_v30, %v2738_v30  ;;  %v1349_v29 = vmul.f32 %v2740_v5, %v2740_v5  ;;  %1703 = vmatpush3.msra.mxu0 %v1436_v13  ;;  %1755 = vmatpush3.msra.mxu1 %v1435_v45 }
 0x78a   :  { %1704 = vmatprep.subr.mxu0 %v1435_v45  ;;  %1740 = vmatprep.subr.mxu1 %v1434_v47 }
 0x78b   :  { %v2749_v19 = vsub.f32 %v1315_v55, %v1339_v40  ;;  %v2751_v32 = vsub.f32 %v1310_v15, %v1334_v62  ;;  %1367 = vadd.xlane.f32.xlu1 %v1354_v10  ;;  %1357 = vadd.xlane.f32.xlu0 %v1349_v29 }
 0x78c   :  { %v1332_v43 = vpop.xlane.xlu1 %1331  ;;  %1705 = vmatpush3.msra.mxu0 %v1435_v45  ;;  %1756 = vmatpush3.msra.mxu1 %v1434_v47 }
 0x78d   :  { %v1340_v21 = vmul.f32 0.0078125, %v1332_v43  ;;  %v1355_v38 = vmul.f32 %v2749_v19, %v2749_v19  ;;  %v1350_v4 = vmul.f32 %v2751_v32, %v2751_v32  ;;  %1706 = vmatprep.subr.mxu0 %v1434_v47  ;;  %1741 = vmatprep.subr.mxu1 %v1433_v23 }
 0x78e   :  { %1707 = vmatpush3.msra.mxu0 %v1434_v47  ;;  %1757 = vmatpush3.msra.mxu1 %v1433_v23 }
 0x78f   :  { %v2763_v7 = vsub.f32 %v1316_v56, %v1340_v21  ;;  %1369 = vadd.xlane.f32.xlu1 %v1355_v38  ;;  %1359 = vadd.xlane.f32.xlu0 %v1350_v4 }
 0x790   :  { %1708 = vmatprep.subr.mxu0 %v1433_v23  ;;  %1742 = vmatprep.subr.mxu1 %v1432_v34 }
 0x791   :  { %v1356_v12 = vmul.f32 %v2763_v7, %v2763_v7  ;;  %1709 = vmatpush3.msra.mxu0 %v1433_v23  ;;  %1758 = vmatpush3.msra.mxu1 %v1432_v34 }
 0x792   :  { %1710 = vmatprep.subr.mxu0 %v1432_v34  ;;  %1743 = vmatprep.subr.mxu1 %v1431_v59 }
 0x793   :  { %1371 = vadd.xlane.f32.xlu1 %v1356_v12  ;;  %1711 = vmatpush3.msra.mxu0 %v1432_v34 }
 0x794   :  { %1759 = vmatpush3.msra.mxu1 %v1431_v59  ;;  %1712 = vmatprep.subr.mxu0 %v1431_v59 }
 0x795   :  { %1744 = vmatprep.subr.mxu1 %v1430_v27  ;;  %1713 = vmatpush3.msra.mxu0 %v1431_v59 }
 0x796   :  { %1760 = vmatpush3.msra.mxu1 %v1430_v27  ;;  %1714 = vmatprep.subr.mxu0 %v1430_v27 }
 0x797   :  { %1745 = vmatprep.subr.mxu1 %v1429_v53  ;;  %1715 = vmatpush3.msra.mxu0 %v1430_v27 }
 0x798   :  { %1761 = vmatpush3.msra.mxu1 %v1429_v53  ;;  %1716 = vmatprep.subr.mxu0 %v1429_v53 }
 0x799   :  { %1717 = vmatpush3.msra.mxu0 %v1429_v53 }
 0x808   :  { %v1362_v20 = vpop.xlane.xlu0 %1361 }
 0x809   :  { %v1375_v31 = vmul.f32 0.0078125, %v1362_v20 }
 0x80b   :  { %v1383_v1 = vadd.f32 1e-05, %v1375_v31 }
 0x80c   :  { %v1364_v3 = vpop.xlane.xlu1 %1363 }
 0x80d   :  { %1817 = vrsqrt.f32 %v1383_v1  ;;  %v1376_v60 = vmul.f32 0.0078125, %v1364_v3 }
 0x80f   :  { %v1384_v6 = vadd.f32 1e-05, %v1376_v60 }
 0x810   :  { %v1366_v37 = vpop.xlane.xlu0 %1365 }
 0x811   :  { %1819 = vrsqrt.f32 %v1384_v6  ;;  %v1377_v63 = vmul.f32 0.0078125, %v1366_v37 }
 0x813   :  { %v1385_v41 = vadd.f32 1e-05, %v1377_v63 }
 0x814   :  { %v1368_v15 = vpop.xlane.xlu1 %1367  ;;  %v1358_v55 = vpop.xlane.xlu0 %1357 }
 0x815   :  { %1821 = vrsqrt.f32 %v1385_v41  ;;  %v1378_v11 = vmul.f32 0.0078125, %v1368_v15  ;;  %v1373_v56 = vmul.f32 0.0078125, %v1358_v55 }
 0x817   :  { %v1386_v33 = vadd.f32 1e-05, %v1378_v11  ;;  %v1381_v36 = vadd.f32 1e-05, %v1373_v56 }
 0x818   :  { %v1370_v22 = vpop.xlane.xlu1 %1369  ;;  %v1360_v46 = vpop.xlane.xlu0 %1359 }
 0x819   :  { %1823 = vrsqrt.f32 %v1386_v33  ;;  %v1379_v49 = vmul.f32 0.0078125, %v1370_v22  ;;  %v1374_v52 = vmul.f32 0.0078125, %v1360_v46 }
 0x81a   :  { %v1818_v24 = vpop.eup %1817  ;;  %1825 = vrsqrt.f32 %v1381_v36 }
 0x81b   :  { %v1387_v58 = vadd.f32 1e-05, %v1379_v49  ;;  %v1382_v54 = vadd.f32 1e-05, %v1374_v52  ;;  %v1399_v50 = vmul.f32 %v1818_v24, %v2726_v17 }
 0x81c   :  { %v1372_v2 = vpop.xlane.xlu1 %1371 }
 0x81d   :  { %1827 = vrsqrt.f32 %v1387_v58  ;;  %v1380_v28 = vmul.f32 0.0078125, %v1372_v2  ;;  %v1411_v25 = vmul.f32 %v1408_v18, %v1399_v50 }
 0x81e   :  { %v1820_v42 = vpop.eup %1819  ;;  %1829 = vrsqrt.f32 %v1382_v54 }
 0x81f   :  { %v1400_v51 = vmul.f32 %v1820_v42, %v2730_v61  ;;  %v1388_v40 = vadd.f32 1e-05, %v1380_v28  ;;  %v1423_v62 = vadd.f32 %v1420_v48, %v1411_v25 }
 0x821   :  { %1831 = vrsqrt.f32 %v1388_v40  ;;  %1721 = vmatprep.mubr.f32.mxu1 %v1423_v62  ;;  %v1412_v9 = vmul.f32 %v1408_v18, %v1400_v51 }
 0x822   :  { %v1822_v10 = vpop.eup %1821 }
 0x823   :  { %v1424_v29 = vadd.f32 %v1420_v48, %v1412_v9  ;;  %v1401_v17 = vmul.f32 %v1822_v10, %v2734_v35 }
 0x825   :  { %1722 = vmatmul.mubr.f32.vlgmr.msra.gmra.mxu1 %v1424_v29  ;;  %v1413_v0 = vmul.f32 %v1408_v18, %v1401_v17 }
 0x826   :  { %v1824_v14 = vpop.eup %1823 }
 0x827   :  { %v1826_v8 = vpop.eup %1825  ;;  %v1425_v16 = vadd.f32 %v1420_v48, %v1413_v0  ;;  %v1402_v43 = vmul.f32 %v1824_v14, %v2738_v30 }
 0x828   :  { %v1397_v21 = vmul.f32 %v1826_v8, %v2740_v5 }
 0x829   :  { %1724 = vmatprep.mubr.f32.mxu1 %v1425_v16  ;;  %v1414_v61 = vmul.f32 %v1408_v18, %v1402_v43 }
 0x82a   :  { %v1828_v38 = vpop.eup %1827  ;;  %v1409_v4 = vmul.f32 %v1408_v18, %v1397_v21 }
 0x82b   :  { %v1830_v39 = vpop.eup %1829  ;;  %v1426_v26 = vadd.f32 %v1420_v48, %v1414_v61  ;;  %v1403_v12 = vmul.f32 %v1828_v38, %v2749_v19  ;;  %v1579_v19 = vld [vmem:[%s2849_s10] ss:$0 sm:$0xff] }
 0x82c   :  { %v1398_v44 = vmul.f32 %v1830_v39, %v2751_v32  ;;  %v1421_v35 = vadd.f32 %v1420_v48, %v1409_v4 }
 0x82d   :  { %1725 = vmatmul.mubr.f32.gmra.mxu1 %v1426_v26  ;;  %v1415_v57 = vmul.f32 %v1408_v18, %v1403_v12 }
 0x82e   :  { %v1832_v13 = vpop.eup %1831  ;;  %1718 = vmatprep.mubr.f32.mxu0 %v1421_v35  ;;  %v1410_v45 = vmul.f32 %v1408_v18, %v1398_v44 }
 0x82f   :  { %v1427_v47 = vadd.f32 %v1420_v48, %v1415_v57  ;;  %v1404_v30 = vmul.f32 %v1832_v13, %v2763_v7 }
 0x830   :  { %v1422_v5 = vadd.f32 %v1420_v48, %v1410_v45 }
 0x831   :  { %1727 = vmatprep.mubr.f32.mxu1 %v1427_v47  ;;  %v1416_v23 = vmul.f32 %v1408_v18, %v1404_v30 }
 0x832   :  { %1719 = vmatmul.mubr.f32.vlgmr.msra.gmra.mxu0 %v1422_v5 }
 0x833   :  { %v1428_v34 = vadd.f32 %v1420_v48, %v1416_v23 }
 0x835   :  { %1728 = vmatmul.mubr.f32.gmra.mxu1 %v1428_v34 }
 0x8e5   :  { %v1723_v32 = vpop.f32.mrf.mxu1 }
 0x8e6   :  { %v1534_v59 = vadd.f32 %v1723_v32, %v1579_v19 }
 0x8e7   :  { %v1528_v27 = vpop.f32.mrf.mxu1 }
 0x8e8   :  { %1560 = vst [vmem:[%s2850_s11 + $0x18] sm:$0xff] %v1534_v59  ;;  %v1529_v53 = vadd.f32 %v1579_v19, %v1528_v27 }
 0x8ea   :  { %1559 = vst [vmem:[%s2850_s11 + $0x10] sm:$0xff] %v1529_v53 }
 0x8ed   :  { %v1726_v7 = vpop.f32.mrf.mxu1 }
 0x8ee   :  { %v1544_v20 = vadd.f32 %v1726_v7, %v1579_v19 }
 0x8ef   :  { %v1538_v31 = vpop.f32.mrf.mxu1 }
 0x8f0   :  { %1562 = vst [vmem:[%s2850_s11 + $0x28] sm:$0xff] %v1544_v20  ;;  %v1539_v1 = vadd.f32 %v1579_v19, %v1538_v31 }
 0x8f2   :  { %1561 = vst [vmem:[%s2850_s11 + $0x20] sm:$0xff] %v1539_v1  ;;  %v1720_v3 = vpop.f32.mrf.mxu0 }
 0x8f3   :  { %v1524_v60 = vadd.f32 %v1720_v3, %v1579_v19 }
 0x8f4   :  { %v1518_v6 = vpop.f32.mrf.mxu0 }
 0x8f5   :  { %1558 = vst [vmem:[%s2850_s11 + $0x8] sm:$0xff] %v1524_v60  ;;  %v1519_v37 = vadd.f32 %v1579_v19, %v1518_v6  ;;  %v1729_v63 = vpop.f32.mrf.mxu1 }
 0x8f6   :  { %v1554_v41 = vadd.f32 %v1729_v63, %v1579_v19 }
 0x8f7   :  { %1557 = vst [vmem:[%s2850_s11] sm:$0xff] %v1519_v37  ;;  %v1548_v15 = vpop.f32.mrf.mxu1 }
 0x8f8   :  { %1564 = vst [vmem:[%s2850_s11 + $0x38] sm:$0xff] %v1554_v41  ;;  %v1549_v55 = vadd.f32 %v1579_v19, %v1548_v15 }
 0x8fa   :  { %1563 = vst [vmem:[%s2850_s11 + $0x30] sm:$0xff] %v1549_v55 }
 0x8fb   :  { %1569 = vsyncpa [#allocation3], 1 }
 0x8fc   :  { %1570 = vsyncpa [#allocation5], 1 }

</bundles_post_ra>
